<compile_context>
chip_gen: v6e
topology: v6e:2x2x1
jax: 0.10.0
libtpu: 0.0.40
codegen_flags: <defaults>
</compile_context>

<pallas_src>
import math
import jax
import jax.numpy as jnp
from jax.experimental import pallas as pl
from jax.experimental.pallas import tpu as pltpu

# ----------------- config (small shapes consistent with the module) -----------------
B = 2                     # batch
NO = 64                   # points per object
N_QUERIES = 128           # cfg['model']['num_train_queries']
NUM_FOURIER = 1           # number_fourier_components (must be 1 for the torch broadcast)
LEN_ROT = 9
LEN_QUERY = LEN_ROT * NUM_FOURIER * 2     # 18
FEAT_DIM = 128            # pn_rotation_net feature dim (input_feat_dim)
MLP_SIZES = [64, 64]      # cfg['model']['mlp_layer_sizes']
BN_EPS = 1e-5
PROB_SCALE = N_QUERIES / math.pi ** 2


# ------------------------------- fused Pallas kernel ---------------------------------
def make_fused_kernel(num_hidden, batch, n_obj, n_queries):
    def kernel(*refs):
        (pcT_ref, q9blk_ref, dcat_ref,
         w1_ref, b1_ref, w2_ref, b2_ref,
         wf_ref, bf_ref, wq_ref, bq_ref) = refs[:11]
        rest = refs[11:]
        hidden_refs = rest[:2 * num_hidden]
        wo_ref, bo_ref, out_ref = rest[2 * num_hidden:]

        # ---------------- backbone (batch folded onto lanes) ----------------
        # TODO(synk): PointNetPPFeat (FPS / ball-query / set-abstraction backbone) is not
        # provided in the reference; this is a deterministic shared-MLP + per-batch global
        # max-pool PointNet stand-in producing the same [B, 128] feature shape.
        pc = pcT_ref[...]                                                  # (3, B*NO)
        h = jnp.maximum(
            jnp.dot(w1_ref[...], pc, preferred_element_type=jnp.float32) + b1_ref[...], 0.0)
        h = jnp.maximum(
            jnp.dot(w2_ref[...], h, preferred_element_type=jnp.float32) + b2_ref[...], 0.0)
        # per-batch global max-pool over lane segments (h >= 0 post-ReLU, so 0-fill is exact)
        lane_pc = jax.lax.broadcasted_iota(jnp.int32, h.shape, 1)
        feats = jnp.concatenate(
            [jnp.max(jnp.where((lane_pc >= b * n_obj) & (lane_pc < (b + 1) * n_obj), h, 0.0),
                     axis=1, keepdims=True)
             for b in range(batch)], axis=1)                               # (FEAT_DIM, B)

        # ---------------- implicit model (batch folded onto lanes) ----------------
        # feat_mlp (nn.Linear) on both batch features at once
        fproj = (jnp.dot(wf_ref[...], feats, preferred_element_type=jnp.float32)
                 + bf_ref[...])                                            # (M0, B)
        # query composition for both batches with a single matmul:
        #   qr9T = [kron(I3,d0^T) | kron(I3,d1^T)] @ blockdiag(Q9^T, Q9^T) -> (9, B*N)
        qr9T = jnp.dot(dcat_ref[...], q9blk_ref[...],
                       preferred_element_type=jnp.float32)                 # (9, B*N)
        # positional encoding + query_mlp (Conv1d k=1) fused into ONE matmul
        sc = jnp.concatenate([jnp.sin(qr9T), jnp.cos(qr9T)], axis=0)       # (18, B*N)
        x = (jnp.dot(wq_ref[...], sc, preferred_element_type=jnp.float32)
             + bq_ref[...])                                                # (M0, B*N)
        # x = relu(feat.unsqueeze(-1) + query_embedded): broadcast each fproj column over
        # its 128-lane segment
        lane_q = jax.lax.broadcasted_iota(jnp.int32, x.shape, 1)
        fcast = fproj[:, batch - 1:batch]
        for b in range(batch - 2, -1, -1):
            fcast = jnp.where(lane_q < (b + 1) * n_queries, fproj[:, b:b + 1], fcast)
        x = jnp.maximum(x + fcast, 0.0)                                    # (M0, B*N)
        # hidden Conv1d(k=1) + folded eval-mode BatchNorm1d + ReLU
        for i in range(num_hidden):
            x = jnp.maximum(
                jnp.dot(hidden_refs[2 * i][...], x, preferred_element_type=jnp.float32)
                + hidden_refs[2 * i + 1][...], 0.0)
        # final Conv1d(mlp_dim, 1, 1) -> lane-dense (1, B*N) logits row
        logits = (jnp.dot(wo_ref[...], x, preferred_element_type=jnp.float32)
                  + bo_ref[...])                                           # (1, B*N)

        # per-batch softmax over the vreg-aligned 128-lane segments, scaled by N / pi^2
        # (exact divide: parity with torch.softmax, negligible cost at this size)
        for b in range(batch):
            lg = logits[:, b * n_queries:(b + 1) * n_queries]
            m = jnp.max(lg, axis=1, keepdims=True)
            e = jnp.exp(lg - m)
            s = jnp.sum(e, axis=1, keepdims=True)
            out_ref[:, b * n_queries:(b + 1) * n_queries] = e * (PROB_SCALE / s)
    return kernel


def fused_forward(pcT_all, q9blk, dcat, params):
    hidden = params["hidden"]
    args = [pcT_all, q9blk, dcat,
            params["w1"], params["b1"], params["w2"], params["b2"],
            params["wf"], params["bf"], params["wq"], params["bq"]]
    for wh, bh in hidden:
        args += [wh, bh]
    args += [params["wo"], params["bo"]]

    batch = pcT_all.shape[1] // NO
    n = q9blk.shape[1] // batch
    vmem = pl.BlockSpec(memory_space=pltpu.MemorySpace.VMEM)
    out = pl.pallas_call(
        make_fused_kernel(len(hidden), batch, NO, n),
        out_shape=jax.ShapeDtypeStruct((1, batch * n), jnp.float32),
        in_specs=[vmem] * len(args),
        out_specs=vmem,
    )(*args)
    return out.reshape(batch, n)


# ------------------------------- glue (jitted plain JAX) ------------------------------
def quat_to_mat(q):
    w, x, y, z = q[..., 0], q[..., 1], q[..., 2], q[..., 3]
    r00 = 1 - 2 * (y * y + z * z); r01 = 2 * (x * y - z * w); r02 = 2 * (x * z + y * w)
    r10 = 2 * (x * y + z * w); r11 = 1 - 2 * (x * x + z * z); r12 = 2 * (y * z - x * w)
    r20 = 2 * (x * z - y * w); r21 = 2 * (y * z + x * w); r22 = 1 - 2 * (x * x + y * y)
    return jnp.stack([jnp.stack([r00, r01, r02], -1),
                      jnp.stack([r10, r11, r12], -1),
                      jnp.stack([r20, r21, r22], -1)], -2)


def random_rotations(key, n):
    # uniform random rotations via normalized quaternions (deterministic stand-in for
    # pytorch3d.random_rotations used by generate_queries_random)
    q = jax.random.normal(key, (n, 4), jnp.float32)
    q = q / jnp.linalg.norm(q, axis=-1, keepdims=True)
    return quat_to_mat(q)


@jax.jit
def _ipdf_forward_jit(obj_pc, gt_r, params, query_key):
    batch = obj_pc.shape[0]
    # generate_queries(num_train_queries, mode='random')
    Q = random_rotations(query_key, N_QUERIES)                     # (N, 3, 3)
    # delta_b = Q[-1]^T @ gt_r_b
    delta = jnp.einsum("ji,bjk->bik", Q[-1], gt_r)                 # (B, 3, 3)
    # qr9 = Q9 @ kron(I3, delta)  =>  qr9^T = kron(I3, delta^T) @ Q9^T (done in-kernel)
    eye3 = jnp.eye(3, dtype=jnp.float32)
    deltaT = jnp.transpose(delta, (0, 2, 1))
    dT = (eye3[None, :, None, :, None] * deltaT[:, None, :, None, :]).reshape(-1, 9, 9)
    dcat = jnp.concatenate([dT[b] for b in range(batch)], axis=1)  # (9, B*9)
    q9T = Q.reshape(N_QUERIES, LEN_ROT).T                          # (9, N)
    q9blk = jnp.zeros((batch * LEN_ROT, batch * N_QUERIES), jnp.float32)
    for b in range(batch):                                         # blockdiag(Q9^T, Q9^T)
        q9blk = q9blk.at[b * LEN_ROT:(b + 1) * LEN_ROT,
                         b * N_QUERIES:(b + 1) * N_QUERIES].set(q9T)
    # lane-merged point cloud: pcT_all[c, b*NO + n] = obj_pc[b, n, c]
    pcT_all = jnp.transpose(obj_pc, (2, 0, 1)).reshape(3, batch * NO)   # (3, B*NO)
    probs = fused_forward(pcT_all, q9blk, dcat, params)            # (B, N), softmax * N/pi^2
    return probs[:, -1]


def ipdf_forward(inputs, params, query_key):
    """IPDFFullNet.forward: returns {'probability': [B]}"""
    if "world_frame_hand_rotation_mat" not in inputs:
        return dict()
    # TODO(synk): predict_rotation / sample_rotations paths (healpix grid + argmax /
    # uniform sampling) are not part of forward() and are not implemented here.
    prob = _ipdf_forward_jit(inputs["obj_pc"],
                             inputs["world_frame_hand_rotation_mat"],
                             params, query_key)
    return {"probability": prob}


# ------------------------------- params ------------------------------------------------
def init_params(key):
    ks = jax.random.split(key, 10)

    def lin_t(k, fan_in, fan_out):
        # (out, in) layout == torch weight layout for Linear / squeezed Conv1d(k=1)
        return (1.0 / math.sqrt(fan_in)) * jax.random.normal(k, (fan_out, fan_in), jnp.float32)

    params = {
        # backbone stand-in: shared MLP 3 -> 64 -> 128, per-batch global max-pool
        "w1": lin_t(ks[0], 3, 64), "b1": jnp.zeros((64, 1), jnp.float32),
        "w2": lin_t(ks[1], 64, FEAT_DIM), "b2": jnp.zeros((FEAT_DIM, 1), jnp.float32),
    }
    m0 = MLP_SIZES[0]
    params["wf"] = lin_t(ks[2], FEAT_DIM, m0)                      # feat_mlp (Linear)
    params["bf"] = 0.01 * jnp.ones((m0, 1), jnp.float32)
    # query_mlp (Conv1d k=1) weight (m0, 18): columns 0-8 act on sin, columns 9-17 on cos
    params["wq"] = lin_t(ks[3], LEN_QUERY, m0)
    params["bq"] = 0.01 * jnp.ones((m0, 1), jnp.float32)

    hidden = []
    dim = m0
    for i, s in enumerate(MLP_SIZES[1:]):
        w = lin_t(ks[5 + i], dim, s)
        b = jnp.zeros((s, 1), jnp.float32)
        # eval-mode BatchNorm1d (gamma=1, beta=0, mean=0, var=1) folded into the conv.
        # TODO(synk): when loading trained weights, fold the real running statistics here.
        scale = jnp.full((s, 1), 1.0 / math.sqrt(1.0 + BN_EPS), jnp.float32)
        shift = jnp.zeros((s, 1), jnp.float32)
        hidden.append((w * scale, b * scale + shift))
        dim = s
    params["hidden"] = hidden
    params["wo"] = lin_t(ks[9], dim, 1)                            # final Conv1d(mlp_dim, 1, 1)
    params["bo"] = jnp.zeros((1, 1), jnp.float32)
    return params


if __name__ == "__main__":
    assert NUM_FOURIER == 1  # len_query = 18; required by the torch broadcast semantics
    key = jax.random.PRNGKey(0)
    k_pc, k_rot, k_params, k_query = jax.random.split(key, 4)

    obj_pc = jax.random.normal(k_pc, (B, NO, 3), jnp.float32)
    gt_r = random_rotations(k_rot, B)                              # [B, 3, 3]
    params = init_params(k_params)

    out = ipdf_forward(
        {"obj_pc": obj_pc, "world_frame_hand_rotation_mat": gt_r},
        params, k_query,
    )
    prob = jax.block_until_ready(out["probability"])
    assert prob.shape == (B,) and prob.dtype == jnp.float32
    assert bool(jnp.all(jnp.isfinite(prob)))
    print("KERNEL_OK")
</pallas_src>

<mosaic_0001>
module attributes {stable_mosaic.version = 11 : i64} {
  func.func @kernel(%arg0: memref<3x128xf32, #tpu.memory_space<vmem>>, %arg1: memref<18x256xf32, #tpu.memory_space<vmem>>, %arg2: memref<9x18xf32, #tpu.memory_space<vmem>>, %arg3: memref<64x3xf32, #tpu.memory_space<vmem>>, %arg4: memref<64x1xf32, #tpu.memory_space<vmem>>, %arg5: memref<128x64xf32, #tpu.memory_space<vmem>>, %arg6: memref<128x1xf32, #tpu.memory_space<vmem>>, %arg7: memref<64x128xf32, #tpu.memory_space<vmem>>, %arg8: memref<64x1xf32, #tpu.memory_space<vmem>>, %arg9: memref<64x18xf32, #tpu.memory_space<vmem>>, %arg10: memref<64x1xf32, #tpu.memory_space<vmem>>, %arg11: memref<64x64xf32, #tpu.memory_space<vmem>>, %arg12: memref<64x1xf32, #tpu.memory_space<vmem>>, %arg13: memref<1x64xf32, #tpu.memory_space<vmem>>, %arg14: memref<1x1xf32, #tpu.memory_space<vmem>>, %arg15: memref<1x256xf32, #tpu.memory_space<vmem>>) attributes {dimension_semantics = [], scalar_prefetch = 0 : i64, scratch_operands = 0 : i64, tpu.core_type = #tpu.core_type<tc>} {
    %c0 = arith.constant 0 : index
    %c0_0 = arith.constant 0 : index
    %0 = vector.load %arg0[%c0, %c0_0] : memref<3x128xf32, #tpu.memory_space<vmem>>, vector<3x128xf32>
    %c0_1 = arith.constant 0 : index
    %c0_2 = arith.constant 0 : index
    %1 = vector.load %arg3[%c0_1, %c0_2] : memref<64x3xf32, #tpu.memory_space<vmem>>, vector<64x3xf32>
    %cst = arith.constant dense<0.000000e+00> : vector<64x128xf32>
    %2 = tpu.matmul %1, %0, %cst {dimension_numbers = #tpu.dot_dimension_numbers<[1], [0], [0], [1], [0, 0, 1, 1], [], []>} : vector<64x3xf32>, vector<3x128xf32>, vector<64x128xf32> -> vector<64x128xf32>
    %c0_3 = arith.constant 0 : index
    %c0_4 = arith.constant 0 : index
    %3 = vector.load %arg4[%c0_3, %c0_4] : memref<64x1xf32, #tpu.memory_space<vmem>>, vector<64x1xf32>
    %4 = vector.broadcast %3 : vector<64x1xf32> to vector<64x128xf32>
    %5 = arith.addf %2, %4 : vector<64x128xf32>
    %cst_5 = arith.constant 0.000000e+00 : f32
    %6 = vector.broadcast %cst_5 : f32 to vector<64x128xf32>
    %7 = arith.maximumf %5, %6 : vector<64x128xf32>
    %c0_6 = arith.constant 0 : index
    %c0_7 = arith.constant 0 : index
    %8 = vector.load %arg5[%c0_6, %c0_7] : memref<128x64xf32, #tpu.memory_space<vmem>>, vector<128x64xf32>
    %cst_8 = arith.constant dense<0.000000e+00> : vector<128x128xf32>
    %9 = tpu.matmul %8, %7, %cst_8 {dimension_numbers = #tpu.dot_dimension_numbers<[1], [0], [0], [1], [0, 0, 1, 1], [], []>} : vector<128x64xf32>, vector<64x128xf32>, vector<128x128xf32> -> vector<128x128xf32>
    %c0_9 = arith.constant 0 : index
    %c0_10 = arith.constant 0 : index
    %10 = vector.load %arg6[%c0_9, %c0_10] : memref<128x1xf32, #tpu.memory_space<vmem>>, vector<128x1xf32>
    %11 = vector.broadcast %10 : vector<128x1xf32> to vector<128x128xf32>
    %12 = arith.addf %9, %11 : vector<128x128xf32>
    %cst_11 = arith.constant 0.000000e+00 : f32
    %13 = vector.broadcast %cst_11 : f32 to vector<128x128xf32>
    %14 = arith.maximumf %12, %13 : vector<128x128xf32>
    %15 = tpu.iota {dimensions = array<i32: 1>} : vector<128x128xi32>
    %c0_i32 = arith.constant 0 : i32
    %16 = vector.broadcast %c0_i32 : i32 to vector<128x128xi32>
    %17 = arith.cmpi sge, %15, %16 : vector<128x128xi32>
    %c64_i32 = arith.constant 64 : i32
    %18 = vector.broadcast %c64_i32 : i32 to vector<128x128xi32>
    %19 = arith.cmpi slt, %15, %18 : vector<128x128xi32>
    %20 = arith.andi %17, %19 : vector<128x128xi1>
    %cst_12 = arith.constant 0.000000e+00 : f32
    %21 = vector.broadcast %cst_12 : f32 to vector<128x128xf32>
    %22 = arith.select %20, %14, %21 : vector<128x128xi1>, vector<128x128xf32>
    %cst_13 = arith.constant dense<0xFF800000> : vector<128xf32>
    %23 = vector.multi_reduction <maximumf>, %22, %cst_13 [1] : vector<128x128xf32> to vector<128xf32>
    %24 = vector.shape_cast %23 : vector<128xf32> to vector<128x1xf32>
    %c64_i32_14 = arith.constant 64 : i32
    %25 = vector.broadcast %c64_i32_14 : i32 to vector<128x128xi32>
    %26 = arith.cmpi sge, %15, %25 : vector<128x128xi32>
    %c128_i32 = arith.constant 128 : i32
    %27 = vector.broadcast %c128_i32 : i32 to vector<128x128xi32>
    %28 = arith.cmpi slt, %15, %27 : vector<128x128xi32>
    %29 = arith.andi %26, %28 : vector<128x128xi1>
    %cst_15 = arith.constant 0.000000e+00 : f32
    %30 = vector.broadcast %cst_15 : f32 to vector<128x128xf32>
    %31 = arith.select %29, %14, %30 : vector<128x128xi1>, vector<128x128xf32>
    %cst_16 = arith.constant dense<0xFF800000> : vector<128xf32>
    %32 = vector.multi_reduction <maximumf>, %31, %cst_16 [1] : vector<128x128xf32> to vector<128xf32>
    %33 = vector.shape_cast %32 : vector<128xf32> to vector<128x1xf32>
    %34 = tpu.concatenate %24, %33 in 1 : vector<128x1xf32>, vector<128x1xf32> -> vector<128x2xf32>
    %c0_17 = arith.constant 0 : index
    %c0_18 = arith.constant 0 : index
    %35 = vector.load %arg7[%c0_17, %c0_18] : memref<64x128xf32, #tpu.memory_space<vmem>>, vector<64x128xf32>
    %cst_19 = arith.constant dense<0.000000e+00> : vector<64x2xf32>
    %36 = tpu.matmul %35, %34, %cst_19 {dimension_numbers = #tpu.dot_dimension_numbers<[1], [0], [0], [1], [0, 0, 1, 1], [], []>} : vector<64x128xf32>, vector<128x2xf32>, vector<64x2xf32> -> vector<64x2xf32>
    %c0_20 = arith.constant 0 : index
    %c0_21 = arith.constant 0 : index
    %37 = vector.load %arg8[%c0_20, %c0_21] : memref<64x1xf32, #tpu.memory_space<vmem>>, vector<64x1xf32>
    %38 = vector.broadcast %37 : vector<64x1xf32> to vector<64x2xf32>
    %39 = arith.addf %36, %38 : vector<64x2xf32>
    %c0_22 = arith.constant 0 : index
    %c0_23 = arith.constant 0 : index
    %40 = vector.load %arg2[%c0_22, %c0_23] : memref<9x18xf32, #tpu.memory_space<vmem>>, vector<9x18xf32>
    %c0_24 = arith.constant 0 : index
    %c0_25 = arith.constant 0 : index
    %41 = vector.load %arg1[%c0_24, %c0_25] : memref<18x256xf32, #tpu.memory_space<vmem>>, vector<18x256xf32>
    %cst_26 = arith.constant dense<0.000000e+00> : vector<9x256xf32>
    %42 = tpu.matmul %40, %41, %cst_26 {dimension_numbers = #tpu.dot_dimension_numbers<[1], [0], [0], [1], [0, 0, 1, 1], [], []>} : vector<9x18xf32>, vector<18x256xf32>, vector<9x256xf32> -> vector<9x256xf32>
    %43 = math.sin %42 : vector<9x256xf32>
    %44 = math.cos %42 : vector<9x256xf32>
    %45 = tpu.concatenate %43, %44 in 0 : vector<9x256xf32>, vector<9x256xf32> -> vector<18x256xf32>
    %c0_27 = arith.constant 0 : index
    %c0_28 = arith.constant 0 : index
    %46 = vector.load %arg9[%c0_27, %c0_28] : memref<64x18xf32, #tpu.memory_space<vmem>>, vector<64x18xf32>
    %cst_29 = arith.constant dense<0.000000e+00> : vector<64x256xf32>
    %47 = tpu.matmul %46, %45, %cst_29 {dimension_numbers = #tpu.dot_dimension_numbers<[1], [0], [0], [1], [0, 0, 1, 1], [], []>} : vector<64x18xf32>, vector<18x256xf32>, vector<64x256xf32> -> vector<64x256xf32>
    %c0_30 = arith.constant 0 : index
    %c0_31 = arith.constant 0 : index
    %48 = vector.load %arg10[%c0_30, %c0_31] : memref<64x1xf32, #tpu.memory_space<vmem>>, vector<64x1xf32>
    %49 = vector.broadcast %48 : vector<64x1xf32> to vector<64x256xf32>
    %50 = arith.addf %47, %49 : vector<64x256xf32>
    %51 = tpu.iota {dimensions = array<i32: 1>} : vector<64x256xi32>
    %52 = vector.extract_strided_slice %39 {offsets = [0, 1], sizes = [64, 1], strides = [1, 1]} : vector<64x2xf32> to vector<64x1xf32>
    %c128_i32_32 = arith.constant 128 : i32
    %53 = vector.broadcast %c128_i32_32 : i32 to vector<64x256xi32>
    %54 = arith.cmpi slt, %51, %53 : vector<64x256xi32>
    %55 = vector.extract_strided_slice %39 {offsets = [0, 0], sizes = [64, 1], strides = [1, 1]} : vector<64x2xf32> to vector<64x1xf32>
    %56 = vector.shape_cast %55 : vector<64x1xf32> to vector<64x1xf32>
    %57 = vector.broadcast %56 : vector<64x1xf32> to vector<64x256xf32>
    %58 = vector.shape_cast %52 : vector<64x1xf32> to vector<64x1xf32>
    %59 = vector.broadcast %58 : vector<64x1xf32> to vector<64x256xf32>
    %60 = arith.select %54, %57, %59 : vector<64x256xi1>, vector<64x256xf32>
    %61 = arith.addf %50, %60 : vector<64x256xf32>
    %cst_33 = arith.constant 0.000000e+00 : f32
    %62 = vector.broadcast %cst_33 : f32 to vector<64x256xf32>
    %63 = arith.maximumf %61, %62 : vector<64x256xf32>
    %c0_34 = arith.constant 0 : index
    %c0_35 = arith.constant 0 : index
    %64 = vector.load %arg11[%c0_34, %c0_35] : memref<64x64xf32, #tpu.memory_space<vmem>>, vector<64x64xf32>
    %cst_36 = arith.constant dense<0.000000e+00> : vector<64x256xf32>
    %65 = tpu.matmul %64, %63, %cst_36 {dimension_numbers = #tpu.dot_dimension_numbers<[1], [0], [0], [1], [0, 0, 1, 1], [], []>} : vector<64x64xf32>, vector<64x256xf32>, vector<64x256xf32> -> vector<64x256xf32>
    %c0_37 = arith.constant 0 : index
    %c0_38 = arith.constant 0 : index
    %66 = vector.load %arg12[%c0_37, %c0_38] : memref<64x1xf32, #tpu.memory_space<vmem>>, vector<64x1xf32>
    %67 = vector.broadcast %66 : vector<64x1xf32> to vector<64x256xf32>
    %68 = arith.addf %65, %67 : vector<64x256xf32>
    %cst_39 = arith.constant 0.000000e+00 : f32
    %69 = vector.broadcast %cst_39 : f32 to vector<64x256xf32>
    %70 = arith.maximumf %68, %69 : vector<64x256xf32>
    %c0_40 = arith.constant 0 : index
    %c0_41 = arith.constant 0 : index
    %71 = vector.load %arg13[%c0_40, %c0_41] : memref<1x64xf32, #tpu.memory_space<vmem>>, vector<1x64xf32>
    %cst_42 = arith.constant dense<0.000000e+00> : vector<1x256xf32>
    %72 = tpu.matmul %71, %70, %cst_42 {dimension_numbers = #tpu.dot_dimension_numbers<[1], [0], [0], [1], [0, 0, 1, 1], [], []>} : vector<1x64xf32>, vector<64x256xf32>, vector<1x256xf32> -> vector<1x256xf32>
    %c0_43 = arith.constant 0 : index
    %c0_44 = arith.constant 0 : index
    %73 = vector.load %arg14[%c0_43, %c0_44] : memref<1x1xf32, #tpu.memory_space<vmem>>, vector<1x1xf32>
    %74 = vector.broadcast %73 : vector<1x1xf32> to vector<1x256xf32>
    %75 = arith.addf %72, %74 : vector<1x256xf32>
    %76 = vector.extract_strided_slice %75 {offsets = [0, 0], sizes = [1, 128], strides = [1, 1]} : vector<1x256xf32> to vector<1x128xf32>
    %cst_45 = arith.constant dense<0xFF800000> : vector<1xf32>
    %77 = vector.multi_reduction <maximumf>, %76, %cst_45 [1] : vector<1x128xf32> to vector<1xf32>
    %78 = vector.shape_cast %77 : vector<1xf32> to vector<1x1xf32>
    %79 = vector.broadcast %78 : vector<1x1xf32> to vector<1x128xf32>
    %80 = arith.subf %76, %79 : vector<1x128xf32>
    %81 = math.exp %80 : vector<1x128xf32>
    %cst_46 = arith.constant dense<0.000000e+00> : vector<1xf32>
    %82 = vector.multi_reduction <add>, %81, %cst_46 [1] : vector<1x128xf32> to vector<1xf32>
    %83 = vector.shape_cast %82 : vector<1xf32> to vector<1x1xf32>
    %cst_47 = arith.constant 12.9691114 : f32
    %84 = vector.broadcast %cst_47 : f32 to vector<1x1xf32>
    %85 = arith.divf %84, %83 : vector<1x1xf32>
    %86 = vector.broadcast %85 : vector<1x1xf32> to vector<1x128xf32>
    %87 = arith.mulf %81, %86 : vector<1x128xf32>
    %c0_48 = arith.constant 0 : index
    %c0_49 = arith.constant 0 : index
    %88 = vector.load %arg15[%c0_48, %c0_49] : memref<1x256xf32, #tpu.memory_space<vmem>>, vector<1x128xf32>
    tpu.vector_store %arg15[%c0_48, %c0_49], %87 {strides = array<i32>} : memref<1x256xf32, #tpu.memory_space<vmem>>, vector<1x128xf32>,
    %89 = vector.extract_strided_slice %75 {offsets = [0, 128], sizes = [1, 128], strides = [1, 1]} : vector<1x256xf32> to vector<1x128xf32>
    %cst_50 = arith.constant dense<0xFF800000> : vector<1xf32>
    %90 = vector.multi_reduction <maximumf>, %89, %cst_50 [1] : vector<1x128xf32> to vector<1xf32>
    %91 = vector.shape_cast %90 : vector<1xf32> to vector<1x1xf32>
    %92 = vector.broadcast %91 : vector<1x1xf32> to vector<1x128xf32>
    %93 = arith.subf %89, %92 : vector<1x128xf32>
    %94 = math.exp %93 : vector<1x128xf32>
    %cst_51 = arith.constant dense<0.000000e+00> : vector<1xf32>
    %95 = vector.multi_reduction <add>, %94, %cst_51 [1] : vector<1x128xf32> to vector<1xf32>
    %96 = vector.shape_cast %95 : vector<1xf32> to vector<1x1xf32>
    %cst_52 = arith.constant 12.9691114 : f32
    %97 = vector.broadcast %cst_52 : f32 to vector<1x1xf32>
    %98 = arith.divf %97, %96 : vector<1x1xf32>
    %99 = vector.broadcast %98 : vector<1x1xf32> to vector<1x128xf32>
    %100 = arith.mulf %94, %99 : vector<1x128xf32>
    %c0_53 = arith.constant 0 : index
    %c128 = arith.constant 128 : index
    %101 = vector.load %arg15[%c0_53, %c128] : memref<1x256xf32, #tpu.memory_space<vmem>>, vector<1x128xf32>
    tpu.vector_store %arg15[%c0_53, %c128], %100 {strides = array<i32>} : memref<1x256xf32, #tpu.memory_space<vmem>>, vector<1x128xf32>,
    return
  }
}

</mosaic_0001>

<bundles_post_ra>
// kernel: squeeze.17
= control target key start
LH: loop header
LB: loop body
LE: loop exit
PB: predicated region body
PF: predicated region fallthrough
CT: control target
= control target key end

     0   :  { %vm48_vm0 = vcmask 1047556   ;;  %vm50_vm1 = vcmask 23552   ;;  %s112_s24 = smov 3   ;;  %vm65_vm2 = vcmask 72752   ;;  %vm82_vm3 = vcmask 48152   ;;  %s170_s0 = inlined_call_operand.vmem [shape: f32[1,3,3,3,3], index: 0, kind: input, shape index: {}]   ;;  %s171_s1 = inlined_call_operand.vmem [shape: f32[9,9], index: 1, kind: output, shape index: {}]  }
   0x1   :  { %v99_v0 = vld [vmem:[%s170_s0 + $0x1c] sm:$0xf]  ;;  %v100_v1 = vld [vmem:[%s170_s0 + $0x18] sm:$0xf]  ;;  %v101_v2 = vld [vmem:[%s170_s0 + $0x14] sm:$0xf] }
   0x2   :  { %14 = vst [vmem:[#allocation0 + $0x38] sm:$0xf] %v99_v0  ;;  %19 = vst [vmem:[#allocation0 + $0x30] sm:$0xf] %v100_v1  ;;  %v102_v3 = vld [vmem:[%s170_s0 + $0x10] sm:$0xf] }
   0x3   :  { %24 = vst [vmem:[#allocation0 + $0x28] sm:$0xf] %v101_v2  ;;  %v103_v4 = vld [vmem:[%s170_s0 + $0xc] sm:$0xf]  ;;  %v104_v5 = vld [vmem:[%s170_s0 + $0x8] sm:$0xf] }
   0x4   :  { %29 = vst [vmem:[#allocation0 + $0x20] sm:$0xf] %v102_v3  ;;  %34 = vst [vmem:[#allocation0 + $0x18] sm:$0xf] %v103_v4  ;;  %v105_v6 = vld [vmem:[%s170_s0 + $0x4] sm:$0xf] }
   0x5   :  { %39 = vst [vmem:[#allocation0 + $0x10] sm:$0xf] %v104_v5  ;;  %v44_v7 = vld [vmem:[%s170_s0] sm:$0xf]  ;;  %43 = vst [vmem:[#allocation0 + $0x8] sm:$0xf] %v105_v6 }
   0x6   :  { %45 = vst [vmem:[#allocation0] sm:$0xf] %v44_v7  ;;  %v98_v8 = vld [vmem:[%s170_s0 + $0x20] sm:$0xf]  ;;  %s111_s0 = smov 6  }
   0x7   :  { %9 = vst [vmem:[#allocation0 + $0x40] sm:$0xf] %v98_v8 }
   0xb   :  { %v60_v9 = vld [vmem:[#allocation0 + $0x2] ss:$8 sm:$0xf0]   ;;  %v77_v10 = vld [vmem:[#allocation0 + $0x1] ss:$8 sm:$0xf0]  }
   0xc   :  { %v47_v15 = vld [vmem:[#allocation0] ss:$8 sm:$0xf0]  }
   0xd   :  { %v58_v11 = vld [vmem:[#allocation0 + $0x2] ss:$8 sm:$0xf]   ;;  %v46_v12 = vld [vmem:[#allocation0] ss:$8 sm:$0xf]  }
   0xe   :  { %v62_v13 = vsel %vm48_vm0, %v60_v9, %v58_v11  ;;  %v75_v14 = vld [vmem:[#allocation0 + $0x1] ss:$8 sm:$0xf]   ;;  %v49_v17 = vsel %vm48_vm0, %v47_v15, %v46_v12  ;;  %v53_v18 = vld [vmem:[#allocation0 + $0x40] sm:$0x1]  }
   0xf   :  { %63 = vrot.lane.b32.xlu0 %v62_v13, %s111_s0  ;;  %v79_v16 = vsel %vm48_vm0, %v77_v10, %v75_v14  ;;  %v68_v19 = vld [vmem:[#allocation0 + $0x42] sm:$0x1]   ;;  %51 = vst.msk [vmem:[%s171_s1] sm:$0xff] %vm50_vm1, %v49_v17   ;;  %106 = vst.msk [vmem:[%s171_s1 + $0x8] sm:$0x1] %vm50_vm1, %v53_v18  }
  0x10   :  { %80 = vrot.lane.b32.xlu1 %v79_v16, %s112_s24  ;;  %v85_v20 = vld [vmem:[#allocation0 + $0x41] sm:$0x1]  }
  0x13   :  { %69 = vrot.lane.b32.xlu0 %v68_v19, %s111_s0 }
  0x14   :  { %86 = vrot.lane.b32.xlu1 %v85_v20, %s112_s24 }
  0x81   :  { %v64_v21 = vpop.permute.xlu0 %63  }
  0x82   :  { %66 = vst.msk [vmem:[%s171_s1] sm:$0xff] %vm65_vm2, %v64_v21   ;;  %v81_v22 = vpop.permute.xlu1 %80  }
  0x83   :  { %83 = vst.msk [vmem:[%s171_s1] sm:$0xff] %vm82_vm3, %v81_v22  }
  0x85   :  { %v70_v23 = vpop.permute.xlu0 %69  }
  0x86   :  { %107 = vst.msk [vmem:[%s171_s1 + $0x8] sm:$0x1] %vm65_vm2, %v70_v23   ;;  %v87_v24 = vpop.permute.xlu1 %86  }
  0x87   :  { %108 = vst.msk [vmem:[%s171_s1 + $0x8] sm:$0x1] %vm82_vm3, %v87_v24  }

// kernel: mul.80
= control target key start
LH: loop header
LB: loop body
LE: loop exit
PB: predicated region body
PF: predicated region fallthrough
CT: control target
= control target key end

     0   :  { %s158_s0 = inlined_call_operand.vmem [shape: f32[2,3,3], index: 0, kind: input, shape index: {}]   ;;  %s159_s1 = inlined_call_operand.vmem [shape: f32[2,3,3,3,3], index: 1, kind: output, shape index: {}]  }
   0x1   :  { %v4_v0 = vld [vmem:[%s158_s0] ss:$0 sm:$0xff]  ;;  %v56_v1 = vld [vmem:[%s158_s0 + $0x2] ss:$0 sm:$0xff]  ;;  %v60_v2 = vld [vmem:[%s158_s0 + $0x4] ss:$0 sm:$0xff] }
   0x2   :  { %5 = vst [vmem:[%s159_s1] sm:$0xf] %v4_v0  ;;  %54 = vst [vmem:[%s159_s1 + $0x18] sm:$0xf] %v4_v0  ;;  %v64_v3 = vld [vmem:[%s158_s0 + $0x1] ss:$0 sm:$0xff] }
   0x3   :  { %55 = vst [vmem:[%s159_s1 + $0x30] sm:$0xf] %v4_v0  ;;  %57 = vst [vmem:[%s159_s1 + $0x8] sm:$0xf] %v56_v1  ;;  %v68_v4 = vld [vmem:[%s158_s0 + $0x3] ss:$0 sm:$0xff] }
   0x4   :  { %58 = vst [vmem:[%s159_s1 + $0x20] sm:$0xf] %v56_v1  ;;  %59 = vst [vmem:[%s159_s1 + $0x38] sm:$0xf] %v56_v1  ;;  %v72_v5 = vld [vmem:[%s158_s0 + $0x5] ss:$0 sm:$0xff] }
   0x5   :  { %61 = vst [vmem:[%s159_s1 + $0x10] sm:$0xf] %v60_v2  ;;  %62 = vst [vmem:[%s159_s1 + $0x28] sm:$0xf] %v60_v2 }
   0x6   :  { %63 = vst [vmem:[%s159_s1 + $0x40] sm:$0xf] %v60_v2  ;;  %65 = vst [vmem:[%s159_s1 + $0x4] sm:$0xf] %v64_v3 }
   0x7   :  { %66 = vst [vmem:[%s159_s1 + $0x1c] sm:$0xf] %v64_v3  ;;  %67 = vst [vmem:[%s159_s1 + $0x34] sm:$0xf] %v64_v3 }
   0x8   :  { %69 = vst [vmem:[%s159_s1 + $0xc] sm:$0xf] %v68_v4  ;;  %70 = vst [vmem:[%s159_s1 + $0x24] sm:$0xf] %v68_v4 }
   0x9   :  { %71 = vst [vmem:[%s159_s1 + $0x3c] sm:$0xf] %v68_v4  ;;  %73 = vst [vmem:[%s159_s1 + $0x14] sm:$0xf] %v72_v5 }
   0xa   :  { %74 = vst [vmem:[%s159_s1 + $0x2c] sm:$0xf] %v72_v5  ;;  %75 = vst [vmem:[%s159_s1 + $0x44] sm:$0xf] %v72_v5 }

// kernel: _ipdf_forward_jit.1
= control target key start
LH: loop header
LB: loop body
LE: loop exit
PB: predicated region body
PF: predicated region fallthrough
CT: control target
= control target key end

     0   :  { %vm134_vm0 = vcmask 1042432   ;;  %vm109_vm1 = vcmask 23552   ;;  %v2738_v3 = vmov 0   ;;  %vm3724_vm2 = vcmask 523264   ;;  %s3708_s0 = inlined_call_operand.vmem [shape: f32[3,128], index: 0, kind: input, shape index: {}]   ;;  %s3709_s3 = inlined_call_operand.vmem [shape: f32[64,3], index: 3, kind: input, shape index: {}]   ;;  %s3710_s4 = inlined_call_operand.vmem [shape: f32[64,1], index: 4, kind: input, shape index: {}]   ;;  %s3711_s6 = inlined_call_operand.vmem [shape: f32[128,1], index: 6, kind: input, shape index: {}]   ;;  %s3712_s5 = inlined_call_operand.vmem [shape: f32[128,64], index: 5, kind: input, shape index: {}]   ;;  %s3713_s8 = inlined_call_operand.vmem [shape: f32[64,1], index: 8, kind: input, shape index: {}]   ;;  %s3714_s7 = inlined_call_operand.vmem [shape: f32[64,128], index: 7, kind: input, shape index: {}]   ;;  %s3715_s10 = inlined_call_operand.vmem [shape: f32[64,1], index: 10, kind: input, shape index: {}]   ;;  %s3716_s1 = inlined_call_operand.vmem [shape: f32[18,256], index: 1, kind: input, shape index: {}]   ;;  %s3717_s2 = inlined_call_operand.vmem [shape: f32[9,18], index: 2, kind: input, shape index: {}]   ;;  %s3718_s12 = inlined_call_operand.vmem [shape: f32[64,1], index: 12, kind: input, shape index: {}]   ;;  %s3719_s9 = inlined_call_operand.vmem [shape: f32[64,18], index: 9, kind: input, shape index: {}]   ;;  %s3720_s14 = inlined_call_operand.<no memory space> [shape: f32[1,1], index: 14, kind: input, shape index: {}]   ;;  %s3721_s11 = inlined_call_operand.vmem [shape: f32[64,64], index: 11, kind: input, shape index: {}]   ;;  %s3722_s13 = inlined_call_operand.vmem [shape: f32[1,64], index: 13, kind: input, shape index: {}]   ;;  %s3723_s15 = inlined_call_operand.vmem [shape: f32[1,256], index: 15, kind: output, shape index: {}]  }
   0x1   :  { %v52_v0 = vld [vmem:[%s3708_s0] sm:$0x7]  ;;  %v54_v2 = vld [vmem:[%s3709_s3 + $0x8] sm:$0xff]  ;;  %2704 = vset.pattern.permute.xlu0 %v2738_v3  ;;  %2705 = vset.pattern.permute.xlu1 %v2738_v3  ;;  %v55_v4 = vld [vmem:[%s3709_s3 + $0x10] sm:$0xff]  ;;  %vm677_vm5 = vcmask 7168   ;;  %vm870_vm6 = vcmask 1041408  }
   0x2   :  { %v53_v1 = vld [vmem:[%s3709_s3] sm:$0xff]  ;;  %2581 = vmatprep.subr.msk.mxu1 %vm134_vm0, %v52_v0  ;;  %v68_v5 = vld [vmem:[%s3710_s4 + $0x38] sm:$0xff]  ;;  %v66_v6 = vld [vmem:[%s3710_s4 + $0x28] sm:$0xff]  ;;  %vm3725_vm7 = vcmask 146432  }
   0x3   :  { %2583 = vmatprep.mubr.msk.f32.mxu1 %vm109_vm1, %v53_v1  ;;  %2582 = vmatpush3.msk.msra.mxu1 %vm134_vm0, %v52_v0  ;;  %v56_v7 = vld [vmem:[%s3709_s3 + $0x18] sm:$0xff]  ;;  %v57_v8 = vld [vmem:[%s3709_s3 + $0x20] sm:$0xff]  ;;  %v67_v9 = vld [vmem:[%s3710_s4 + $0x30] sm:$0xff] }
   0x4   :  { %2584 = vmatmul.mubr.msk.f32.vlgmr.msra.gmra.mxu1 %vm109_vm1, %v54_v2  ;;  %106 = vperm.xlu0 %2704, %v68_v5   ;;  %v65_v10 = vld [vmem:[%s3710_s4 + $0x20] sm:$0xff]  ;;  %v58_v11 = vld [vmem:[%s3709_s3 + $0x28] sm:$0xff]  ;;  %v59_v12 = vld [vmem:[%s3709_s3 + $0x30] sm:$0xff] }
   0x5   :  { %2586 = vmatprep.mubr.msk.f32.mxu1 %vm109_vm1, %v55_v4  ;;  %96 = vperm.xlu1 %2705, %v66_v6   ;;  %v64_v13 = vld [vmem:[%s3710_s4 + $0x18] sm:$0xff]  ;;  %v63_v14 = vld [vmem:[%s3710_s4 + $0x10] sm:$0xff]  ;;  %v62_v16 = vld [vmem:[%s3710_s4 + $0x8] sm:$0xff] }
   0x6   :  { %v60_v15 = vld [vmem:[%s3709_s3 + $0x38] sm:$0xff]  ;;  %v61_v17 = vld [vmem:[%s3710_s4] sm:$0xff]  ;;  %v281_v19 = vld [vmem:[%s3711_s6 + $0x70] sm:$0xff] }
   0x7   :  { %v282_v18 = vld [vmem:[%s3711_s6 + $0x78] sm:$0xff]  ;;  %v280_v20 = vld [vmem:[%s3711_s6 + $0x68] sm:$0xff]  ;;  %v279_v21 = vld [vmem:[%s3711_s6 + $0x60] sm:$0xff] }
   0x8   :  { %2587 = vmatmul.mubr.msk.f32.gmra.mxu1 %vm109_vm1, %v56_v7  ;;  %101 = vperm.xlu0 %2704, %v67_v9   ;;  %v278_v22 = vld [vmem:[%s3711_s6 + $0x58] sm:$0xff]  ;;  %v277_v23 = vld [vmem:[%s3711_s6 + $0x50] sm:$0xff]  ;;  %v276_v24 = vld [vmem:[%s3711_s6 + $0x48] sm:$0xff] }
   0x9   :  { %2589 = vmatprep.mubr.msk.f32.mxu1 %vm109_vm1, %v57_v8  ;;  %91 = vperm.xlu1 %2705, %v65_v10   ;;  %v275_v25 = vld [vmem:[%s3711_s6 + $0x40] sm:$0xff]  ;;  %v274_v26 = vld [vmem:[%s3711_s6 + $0x38] sm:$0xff]  ;;  %v273_v27 = vld [vmem:[%s3711_s6 + $0x30] sm:$0xff] }
   0xa   :  { %v272_v28 = vld [vmem:[%s3711_s6 + $0x28] sm:$0xff]  ;;  %v271_v29 = vld [vmem:[%s3711_s6 + $0x20] sm:$0xff]  ;;  %v270_v30 = vld [vmem:[%s3711_s6 + $0x18] sm:$0xff] }
   0xb   :  { %v269_v31 = vld [vmem:[%s3711_s6 + $0x10] sm:$0xff]  ;;  %v268_v32 = vld [vmem:[%s3711_s6 + $0x8] sm:$0xff]  ;;  %v267_v33 = vld [vmem:[%s3711_s6] sm:$0xff] }
   0xc   :  { %2590 = vmatmul.mubr.msk.f32.gmra.mxu1 %vm109_vm1, %v58_v11  ;;  %86 = vperm.xlu0 %2704, %v64_v13   ;;  %v251_v34 = vld [vmem:[%s3712_s5] sm:$0xff]  ;;  %v252_v4 = vld [vmem:[%s3712_s5 + $0x8] sm:$0xff]  ;;  %v253_v5 = vld [vmem:[%s3712_s5 + $0x10] sm:$0xff] }
   0xd   :  { %2592 = vmatprep.mubr.msk.f32.mxu1 %vm109_vm1, %v59_v12  ;;  %81 = vperm.xlu1 %2705, %v63_v14   ;;  %v254_v6 = vld [vmem:[%s3712_s5 + $0x18] sm:$0xff]  ;;  %v255_v7 = vld [vmem:[%s3712_s5 + $0x20] sm:$0xff]  ;;  %v256_v8 = vld [vmem:[%s3712_s5 + $0x28] sm:$0xff] }
   0xe   :  { %v257_v9 = vld [vmem:[%s3712_s5 + $0x30] sm:$0xff]  ;;  %v258_v10 = vld [vmem:[%s3712_s5 + $0x38] sm:$0xff]  ;;  %v259_v11 = vld [vmem:[%s3712_s5 + $0x40] sm:$0xff] }
   0xf   :  { %v260_v12 = vld [vmem:[%s3712_s5 + $0x48] sm:$0xff]  ;;  %v261_v13 = vld [vmem:[%s3712_s5 + $0x50] sm:$0xff]  ;;  %v262_v14 = vld [vmem:[%s3712_s5 + $0x58] sm:$0xff] }
  0x10   :  { %2593 = vmatmul.mubr.msk.f32.gmra.mxu1 %vm109_vm1, %v60_v15  ;;  %76 = vperm.xlu0 %2704, %v62_v16   ;;  %v263_v15 = vld [vmem:[%s3712_s5 + $0x60] sm:$0xff]  ;;  %v264_v16 = vld [vmem:[%s3712_s5 + $0x68] sm:$0xff] }
  0x11   :  { %71 = vperm.xlu1 %2705, %v61_v17   ;;  %2611 = vmatprep.mubr.msk.f32.mxu1 %vm3724_vm2, %v251_v34  ;;  %v265_v17 = vld [vmem:[%s3712_s5 + $0x70] sm:$0xff] }
  0x14   :  { %360 = vperm.xlu0 %2704, %v282_v18   ;;  %v266_v18 = vld [vmem:[%s3712_s5 + $0x78] sm:$0xff] }
  0x15   :  { %355 = vperm.xlu1 %2705, %v281_v19  }
  0x18   :  { %350 = vperm.xlu0 %2704, %v280_v20  }
  0x19   :  { %345 = vperm.xlu1 %2705, %v279_v21  }
  0x1c   :  { %340 = vperm.xlu0 %2704, %v278_v22  }
  0x1d   :  { %335 = vperm.xlu1 %2705, %v277_v23  }
  0x20   :  { %330 = vperm.xlu0 %2704, %v276_v24  }
  0x21   :  { %325 = vperm.xlu1 %2705, %v275_v25  }
  0x24   :  { %320 = vperm.xlu0 %2704, %v274_v26  }
  0x25   :  { %315 = vperm.xlu1 %2705, %v273_v27   ;;  %v573_v27 = vlaneseq }
  0x28   :  { %310 = vperm.xlu0 %2704, %v272_v28  }
  0x29   :  { %305 = vperm.xlu1 %2705, %v271_v29  }
  0x2c   :  { %300 = vperm.xlu0 %2704, %v270_v30  }
  0x2d   :  { %295 = vperm.xlu1 %2705, %v269_v31   ;;  %v3011_v31 = vand.u32 127, %v573_v27 }
  0x2f   :  { %vm626_vm3 = vcmp.ge.s32.totalorder %v3011_v31, 64  ;;  %vm576_vm4 = vcmp.lt.s32.totalorder %v3011_v31, 64  ;;  %v706_v31 = vld [vmem:[%s3713_s8 + $0x20] sm:$0xff] }
  0x30   :  { %290 = vperm.xlu0 %2704, %v268_v32  }
  0x31   :  { %285 = vperm.xlu1 %2705, %v267_v33  }
  0x7f   :  { %v107_v37 = vpop.permute.xlu0 %106 }
  0x80   :  { %v97_v39 = vpop.permute.xlu1 %96 }
  0x83   :  { %v102_v42 = vpop.permute.xlu0 %101 }
  0x84   :  { %v92_v44 = vpop.permute.xlu1 %91 }
  0x87   :  { %v87_v51 = vpop.permute.xlu0 %86 }
  0x88   :  { %v82_v54 = vpop.permute.xlu1 %81 }
  0x8b   :  { %v77_v59 = vpop.permute.xlu0 %76 }
  0x8c   :  { %v72_v62 = vpop.permute.xlu1 %71 }
  0x8f   :  { %v361_v26 = vpop.permute.xlu0 %360 }
  0x90   :  { %v3000_v19 = vpop.permute.xlu1 %355 }
  0x93   :  { %v351_v33 = vpop.permute.xlu0 %350 }
  0x94   :  { %v346_v20 = vpop.permute.xlu1 %345 }
  0x98   :  { %v336_v21 = vpop.permute.xlu1 %335 }
  0x9c   :  { %v326_v22 = vpop.permute.xlu1 %325 }
  0xa0   :  { %v3002_v23 = vpop.permute.xlu1 %315 }
  0xa4   :  { %v3004_v24 = vpop.permute.xlu1 %305 }
  0xa8   :  { %v3006_v25 = vpop.permute.xlu1 %295 }
  0xac   :  { %v286_v29 = vpop.permute.xlu1 %285 }
  0xc4   :  { %v2585_v35 = vpop.f32.mrf.mxu1 }
  0xc5   :  { %v210_v60 = vadd.f32 %v2585_v35, %v77_v59 }
  0xc6   :  { %v204_v36 = vpop.f32.mrf.mxu1 }
  0xc7   :  { %v205_v63 = vadd.f32 %v204_v36, %v72_v62  ;;  %v244_v1 = vmax.f32 %v210_v60, 0.0 }
  0xc8   :  { %v2588_v38 = vpop.f32.mrf.mxu1 }
  0xc9   :  { %v220_v55 = vadd.f32 %v2588_v38, %v87_v51  ;;  %v243_v2 = vmax.f32 %v205_v63, 0.0 }
  0xca   :  { %v214_v40 = vpop.f32.mrf.mxu1 }
  0xcb   :  { %v215_v57 = vadd.f32 %v214_v40, %v82_v54  ;;  %v246_v61 = vmax.f32 %v220_v55, 0.0 }
  0xcc   :  { %v2591_v41 = vpop.f32.mrf.mxu1 }
  0xcd   :  { %v230_v48 = vadd.f32 %v2591_v41, %v97_v39  ;;  %v245_v0 = vmax.f32 %v215_v57, 0.0  ;;  %v341_v39 = vpop.permute.xlu0 %340 }
  0xce   :  { %v224_v43 = vpop.f32.mrf.mxu1 }
  0xcf   :  { %v225_v52 = vadd.f32 %v224_v43, %v92_v44  ;;  %v248_v56 = vmax.f32 %v230_v48, 0.0 }
  0xd0   :  { %v2594_v45 = vpop.f32.mrf.mxu1 }
  0xd1   :  { %v240_v46 = vadd.f32 %v2594_v45, %v107_v37  ;;  %v247_v58 = vmax.f32 %v225_v52, 0.0  ;;  %v331_v43 = vpop.permute.xlu0 %330 }
  0xd2   :  { %v234_v47 = vpop.f32.mrf.mxu1 }
  0xd3   :  { %v250_v49 = vmax.f32 %v240_v46, 0.0  ;;  %v235_v50 = vadd.f32 %v234_v47, %v102_v42 }
  0xd5   :  { %v249_v53 = vmax.f32 %v235_v50, 0.0  ;;  %2595 = vmatprep.subr.mxu1 %v250_v49 }
  0xd6   :  { %2596 = vmatpush3.msra.mxu1 %v250_v49 }
  0xd7   :  { %2597 = vmatprep.subr.mxu1 %v249_v53 }
  0xd8   :  { %2598 = vmatpush3.msra.mxu1 %v249_v53 }
  0xd9   :  { %2599 = vmatprep.subr.mxu1 %v248_v56 }
  0xda   :  { %2600 = vmatpush3.msra.mxu1 %v248_v56 }
  0xdb   :  { %2601 = vmatprep.subr.mxu1 %v247_v58 }
  0xdc   :  { %2602 = vmatpush3.msra.mxu1 %v247_v58 }
  0xdd   :  { %2603 = vmatprep.subr.mxu1 %v246_v61 }
  0xde   :  { %2604 = vmatpush3.msra.mxu1 %v246_v61 }
  0xdf   :  { %2605 = vmatprep.subr.mxu1 %v245_v0 }
  0xe0   :  { %2606 = vmatpush3.msra.mxu1 %v245_v0 }
  0xe1   :  { %2607 = vmatprep.subr.mxu1 %v244_v1 }
  0xe2   :  { %2608 = vmatpush3.msra.mxu1 %v244_v1 }
  0xe3   :  { %2609 = vmatprep.subr.mxu1 %v243_v2 }
  0xe4   :  { %2610 = vmatpush3.msra.mxu1 %v243_v2 }
  0xe5   :  { %2612 = vmatmul.mubr.msk.f32.vlgmr.msra.gmra.mxu1 %vm3724_vm2, %v252_v4 }
  0xe6   :  { %2614 = vmatprep.mubr.msk.f32.mxu1 %vm3724_vm2, %v253_v5 }
  0xe9   :  { %2615 = vmatmul.mubr.msk.f32.gmra.mxu1 %vm3724_vm2, %v254_v6 }
  0xea   :  { %2617 = vmatprep.mubr.msk.f32.mxu1 %vm3724_vm2, %v255_v7 }
  0xed   :  { %2618 = vmatmul.mubr.msk.f32.gmra.mxu1 %vm3724_vm2, %v256_v8 }
  0xee   :  { %2620 = vmatprep.mubr.msk.f32.mxu1 %vm3724_vm2, %v257_v9 }
  0xf1   :  { %2621 = vmatmul.mubr.msk.f32.gmra.mxu1 %vm3724_vm2, %v258_v10 }
  0xf2   :  { %2623 = vmatprep.mubr.msk.f32.mxu1 %vm3724_vm2, %v259_v11  ;;  %v321_v11 = vpop.permute.xlu0 %320 }
  0xf5   :  { %2624 = vmatmul.mubr.msk.f32.gmra.mxu1 %vm3724_vm2, %v260_v12 }
  0xf6   :  { %2626 = vmatprep.mubr.msk.f32.mxu1 %vm3724_vm2, %v261_v13 }
  0xf9   :  { %2627 = vmatmul.mubr.msk.f32.gmra.mxu1 %vm3724_vm2, %v262_v14 }
  0xfa   :  { %2629 = vmatprep.mubr.msk.f32.mxu1 %vm3724_vm2, %v263_v15 }
  0xfd   :  { %2630 = vmatmul.mubr.msk.f32.gmra.mxu1 %vm3724_vm2, %v264_v16 }
  0xfe   :  { %2632 = vmatprep.mubr.msk.f32.mxu1 %vm3724_vm2, %v265_v17 }
 0x101   :  { %2633 = vmatmul.mubr.msk.f32.gmra.mxu1 %vm3724_vm2, %v266_v18 }
 0x1a5   :  { %v3008_v28 = vpop.f32.mrf.mxu1 }
 0x1a7   :  { %v478_v30 = vpop.f32.mrf.mxu1 }
 0x1a8   :  { %v3013_v32 = vadd.f32 %v478_v30, %v286_v29 }
 0x1a9   :  { %v3015_v34 = vpop.f32.mrf.mxu1 }
 0x1aa   :  { %v557_v35 = vmax.f32 %v3013_v32, 0.0  ;;  %v707_v32 = vld [vmem:[%s3713_s8 + $0x28] sm:$0xff] }
 0x1ab   :  { %v3018_v36 = vpop.f32.mrf.mxu1 }
 0x1ac   :  { %v3025_v37 = vsel %vm626_vm3, %v557_v35, 0.0 }
 0x1ad   :  { %v3027_v38 = vpop.f32.mrf.mxu1 }
 0x1af   :  { %v3029_v40 = vpop.f32.mrf.mxu1 }
 0x1b1   :  { %v2622_v41 = vpop.f32.mrf.mxu1 }
 0x1b2   :  { %v514_v12 = vadd.f32 %v2622_v41, %v321_v11  ;;  %v499_v41 = vadd.f32 %v3029_v40, %v3004_v24  ;;  %v489_v40 = vadd.f32 %v3018_v36, %v3006_v25 }
 0x1b3   :  { %v508_v42 = vpop.f32.mrf.mxu1 }
 0x1b4   :  { %v564_v17 = vmax.f32 %v514_v12, 0.0  ;;  %v509_v18 = vadd.f32 %v508_v42, %v3002_v23 }
 0x1b5   :  { %v2625_v44 = vpop.f32.mrf.mxu1 }
 0x1b6   :  { %v524_v45 = vadd.f32 %v2625_v44, %v331_v43  ;;  %v563_v30 = vmax.f32 %v509_v18, 0.0  ;;  %v585_v23 = vsel %vm576_vm4, %v564_v17, 0.0 }
 0x1b7   :  { %v518_v46 = vpop.f32.mrf.mxu1 }
 0x1b8   :  { %v566_v47 = vmax.f32 %v524_v45, 0.0  ;;  %v519_v48 = vadd.f32 %v518_v46, %v326_v22  ;;  %v561_v45 = vmax.f32 %v499_v41, 0.0 }
 0x1b9   :  { %v2628_v49 = vpop.f32.mrf.mxu1 }
 0x1ba   :  { %v565_v50 = vmax.f32 %v519_v48, 0.0  ;;  %v534_v51 = vadd.f32 %v2628_v49, %v341_v39  ;;  %v638_v52 = vsel %vm626_vm3, %v566_v47, 0.0  ;;  %v587_v53 = vsel %vm576_vm4, %v566_v47, 0.0 }
 0x1bb   :  { %663 = vmax.xlane.f32.xlu0 %v638_v52  ;;  %612 = vmax.xlane.f32.xlu1 %v587_v53  ;;  %v528_v54 = vpop.f32.mrf.mxu1  ;;  %v636_v39 = vsel %vm626_vm3, %v564_v17, 0.0  ;;  %v635_v48 = vsel %vm626_vm3, %v563_v30, 0.0  ;;  %v582_v49 = vsel %vm576_vm4, %v561_v45, 0.0  ;;  %v633_v36 = vsel %vm626_vm3, %v561_v45, 0.0 }
 0x1bc   :  { %v568_v55 = vmax.f32 %v534_v51, 0.0  ;;  %v529_v56 = vadd.f32 %v528_v54, %v336_v21  ;;  %v637_v57 = vsel %vm626_vm3, %v565_v50, 0.0  ;;  %v586_v58 = vsel %vm576_vm4, %v565_v50, 0.0 }
 0x1bd   :  { %v2631_v59 = vpop.f32.mrf.mxu1  ;;  %v559_v51 = vmax.f32 %v489_v40, 0.0 }
 0x1be   :  { %v567_v60 = vmax.f32 %v529_v56, 0.0  ;;  %v544_v61 = vadd.f32 %v2631_v59, %v351_v33  ;;  %v640_v62 = vsel %vm626_vm3, %v568_v55, 0.0  ;;  %v589_v63 = vsel %vm576_vm4, %v568_v55, 0.0  ;;  %v709_v59 = vld [vmem:[%s3713_s8 + $0x38] sm:$0xff] }
 0x1bf   :  { %661 = vmax.xlane.f32.xlu0 %v637_v57  ;;  %610 = vmax.xlane.f32.xlu1 %v586_v58  ;;  %v538_v0 = vpop.f32.mrf.mxu1  ;;  %v580_v54 = vsel %vm576_vm4, %v559_v51, 0.0  ;;  %v631_v56 = vsel %vm626_vm3, %v559_v51, 0.0  ;;  %v578_v57 = vsel %vm576_vm4, %v557_v35, 0.0  ;;  %v694_v35 = vld [vmem:[%s3714_s7] sm:$0xff] }
 0x1c0   :  { %v570_v1 = vmax.f32 %v544_v61, 0.0  ;;  %v539_v2 = vadd.f32 %v538_v0, %v346_v20  ;;  %v639_v4 = vsel %vm626_vm3, %v567_v60, 0.0  ;;  %v588_v5 = vsel %vm576_vm4, %v567_v60, 0.0  ;;  %2667 = vmatprep.mubr.f32.mxu0 %v694_v35  ;;  %v708_v60 = vld [vmem:[%s3713_s8 + $0x30] sm:$0xff]  ;;  %v702_v61 = vld [vmem:[%s3713_s8] sm:$0xff] }
 0x1c1   :  { %v2634_v6 = vpop.f32.mrf.mxu1  ;;  %v2739_v0 = vmov 0.0  }
 0x1c2   :  { %v569_v7 = vmax.f32 %v539_v2, 0.0  ;;  %v554_v8 = vadd.f32 %v2634_v6, %v361_v26  ;;  %v642_v9 = vsel %vm626_vm3, %v570_v1, 0.0  ;;  %v591_v10 = vsel %vm576_vm4, %v570_v1, 0.0  ;;  %v311_v26 = vpop.permute.xlu0 %310  ;;  %2260 = vmatprep.mubr.f32.mxu1 %v2739_v0  ;;  %v703_v1 = vld [vmem:[%s3713_s8 + $0x8] sm:$0xff]  ;;  %v1809_v6 = vld [vmem:[%s3715_s10 + $0x20] sm:$0xff] }
 0x1c3   :  { %667 = vmax.xlane.f32.xlu0 %v640_v62  ;;  %616 = vmax.xlane.f32.xlu1 %v589_v63  ;;  %v548_v16 = vpop.f32.mrf.mxu1  ;;  %v504_v29 = vadd.f32 %v3027_v38, %v311_v26  ;;  %v584_v38 = vsel %vm576_vm4, %v563_v30, 0.0  ;;  %v705_v62 = vld [vmem:[%s3713_s8 + $0x18] sm:$0xff]  ;;  %v1811_v63 = vld [vmem:[%s3715_s10 + $0x30] sm:$0xff]  ;;  %v1810_v2 = vld [vmem:[%s3715_s10 + $0x28] sm:$0xff] }
 0x1c4   :  { %v572_v13 = vmax.f32 %v554_v8, 0.0  ;;  %v641_v14 = vsel %vm626_vm3, %v569_v7, 0.0  ;;  %v590_v15 = vsel %vm576_vm4, %v569_v7, 0.0  ;;  %v549_v20 = vadd.f32 %v548_v16, %v3000_v19  ;;  %v1806_v7 = vld [vmem:[%s3715_s10 + $0x8] sm:$0xff]  ;;  %v1808_v8 = vld [vmem:[%s3715_s10 + $0x18] sm:$0xff] }
 0x1c5   :  { %v562_v19 = vmax.f32 %v504_v29, 0.0 }
 0x1c6   :  { %v593_v21 = vsel %vm576_vm4, %v572_v13, 0.0  ;;  %v644_v22 = vsel %vm626_vm3, %v572_v13, 0.0  ;;  %v571_v33 = vmax.f32 %v549_v20, 0.0  ;;  %v301_v43 = vpop.permute.xlu0 %300 }
 0x1c7   :  { %665 = vmax.xlane.f32.xlu0 %v639_v4  ;;  %614 = vmax.xlane.f32.xlu1 %v588_v5  ;;  %v494_v44 = vadd.f32 %v3015_v34, %v301_v43  ;;  %v583_v47 = vsel %vm576_vm4, %v562_v19, 0.0  ;;  %v634_v52 = vsel %vm626_vm3, %v562_v19, 0.0  ;;  %v1812_v4 = vld [vmem:[%s3715_s10 + $0x38] sm:$0xff]  ;;  %v1807_v5 = vld [vmem:[%s3715_s10 + $0x10] sm:$0xff] }
 0x1c8   :  { %v592_v42 = vsel %vm576_vm4, %v571_v33, 0.0  ;;  %v643_v46 = vsel %vm626_vm3, %v571_v33, 0.0 }
 0x1c9   :  { %v560_v24 = vmax.f32 %v494_v44, 0.0 }
 0x1ca   :  { %v291_v34 = vpop.permute.xlu0 %290 }
 0x1cb   :  { %671 = vmax.xlane.f32.xlu0 %v642_v9  ;;  %620 = vmax.xlane.f32.xlu1 %v591_v10  ;;  %v484_v50 = vadd.f32 %v3008_v28, %v291_v34  ;;  %v581_v53 = vsel %vm576_vm4, %v560_v24, 0.0  ;;  %v632_v28 = vsel %vm626_vm3, %v560_v24, 0.0  ;;  %v1805_v9 = vld [vmem:[%s3715_s10] sm:$0xff] }
 0x1cd   :  { %v558_v25 = vmax.f32 %v484_v50, 0.0 }
 0x1cf   :  { %669 = vmax.xlane.f32.xlu0 %v641_v14  ;;  %618 = vmax.xlane.f32.xlu1 %v590_v15  ;;  %v579_v55 = vsel %vm576_vm4, %v558_v25, 0.0  ;;  %v630_v58 = vsel %vm626_vm3, %v558_v25, 0.0 }
 0x1d3   :  { %624 = vmax.xlane.f32.xlu0 %v593_v21  ;;  %675 = vmax.xlane.f32.xlu1 %v644_v22 }
 0x1d7   :  { %659 = vmax.xlane.f32.xlu0 %v636_v39  ;;  %608 = vmax.xlane.f32.xlu1 %v585_v23 }
 0x1db   :  { %622 = vmax.xlane.f32.xlu0 %v592_v42  ;;  %606 = vmax.xlane.f32.xlu1 %v584_v38 }
 0x1df   :  { %673 = vmax.xlane.f32.xlu0 %v643_v46  ;;  %604 = vmax.xlane.f32.xlu1 %v583_v47 }
 0x1e3   :  { %657 = vmax.xlane.f32.xlu0 %v635_v48  ;;  %602 = vmax.xlane.f32.xlu1 %v582_v49 }
 0x1e7   :  { %655 = vmax.xlane.f32.xlu0 %v634_v52  ;;  %600 = vmax.xlane.f32.xlu1 %v581_v53 }
 0x1eb   :  { %653 = vmax.xlane.f32.xlu0 %v633_v36  ;;  %598 = vmax.xlane.f32.xlu1 %v580_v54 }
 0x1ef   :  { %651 = vmax.xlane.f32.xlu0 %v632_v28  ;;  %596 = vmax.xlane.f32.xlu1 %v579_v55 }
 0x1f3   :  { %649 = vmax.xlane.f32.xlu0 %v631_v56  ;;  %594 = vmax.xlane.f32.xlu1 %v578_v57 }
 0x1f7   :  { %647 = vmax.xlane.f32.xlu0 %v630_v58 }
 0x1fb   :  { %645 = vmax.xlane.f32.xlu0 %v3025_v37  ;;  %v704_v37 = vld [vmem:[%s3713_s8 + $0x10] sm:$0xff] }
 0x204   :  { %747 = vperm.xlu1 %2705, %v709_v59  }
 0x208   :  { %737 = vperm.xlu1 %2705, %v707_v32  }
 0x20c   :  { %732 = vperm.xlu1 %2705, %v706_v31  }
 0x210   :  { %722 = vperm.xlu1 %2705, %v704_v37   ;;  %v695_v37 = vld [vmem:[%s3714_s7 + $0x8] sm:$0xff] }
 0x211   :  { %742 = vperm.xlu0 %2704, %v708_v60   ;;  %v862_v60 = vld [vmem:[%s3716_s1 + $0x28] sm:$0x3] }
 0x214   :  { %712 = vperm.xlu1 %2705, %v702_v61   ;;  %v696_v61 = vld [vmem:[%s3714_s7 + $0x10] sm:$0xff] }
 0x215   :  { %727 = vperm.xlu0 %2704, %v705_v62   ;;  %v861_v62 = vld [vmem:[%s3716_s1 + $0x20] sm:$0x3] }
 0x218   :  { %1845 = vperm.xlu1 %2705, %v1811_v63   ;;  %v860_v63 = vld [vmem:[%s3716_s1 + $0x18] sm:$0xff] }
 0x219   :  { %717 = vperm.xlu0 %2704, %v703_v1   ;;  %v859_v1 = vld [vmem:[%s3716_s1 + $0x10] sm:$0xff] }
 0x21c   :  { %1840 = vperm.xlu1 %2705, %v1810_v2   ;;  %v697_v2 = vld [vmem:[%s3714_s7 + $0x18] sm:$0xff] }
 0x21d   :  { %1850 = vperm.xlu0 %2704, %v1812_v4   ;;  %v858_v4 = vld [vmem:[%s3716_s1 + $0x8] sm:$0xff] }
 0x220   :  { %1825 = vperm.xlu1 %2705, %v1807_v5   ;;  %v698_v5 = vld [vmem:[%s3714_s7 + $0x20] sm:$0xff] }
 0x221   :  { %1835 = vperm.xlu0 %2704, %v1809_v6   ;;  %v857_v6 = vld [vmem:[%s3716_s1] sm:$0xff] }
 0x224   :  { %1820 = vperm.xlu1 %2705, %v1806_v7   ;;  %v699_v7 = vld [vmem:[%s3714_s7 + $0x28] sm:$0xff] }
 0x225   :  { %1830 = vperm.xlu0 %2704, %v1808_v8   ;;  %v700_v8 = vld [vmem:[%s3714_s7 + $0x30] sm:$0xff] }
 0x229   :  { %1815 = vperm.xlu0 %2704, %v1805_v9   ;;  %v701_v9 = vld [vmem:[%s3714_s7 + $0x38] sm:$0xff] }
 0x244   :  { %v664_v10 = vpop.xlane.xlu0 %663  ;;  %v613_v11 = vpop.xlane.xlu1 %612 }
 0x245   :  { %v687_v49 = vsel %vm677_vm5, %v613_v11, %v664_v10  ;;  %v855_v10 = vld [vmem:[%s3717_s2] sm:$0xff]  ;;  %v856_v11 = vld [vmem:[%s3717_s2 + $0x8] sm:$0x1] }
 0x248   :  { %v662_v12 = vpop.xlane.xlu0 %661  ;;  %v611_v13 = vpop.xlane.xlu1 %610 }
 0x249   :  { %v686_v50 = vsel %vm677_vm5, %v611_v13, %v662_v12 }
 0x24c   :  { %v668_v14 = vpop.xlane.xlu0 %667  ;;  %v617_v15 = vpop.xlane.xlu1 %616 }
 0x24d   :  { %v689_v47 = vsel %vm677_vm5, %v617_v15, %v668_v14 }
 0x250   :  { %v666_v16 = vpop.xlane.xlu0 %665  ;;  %v615_v17 = vpop.xlane.xlu1 %614 }
 0x251   :  { %v688_v40 = vsel %vm677_vm5, %v615_v17, %v666_v16 }
 0x254   :  { %v672_v18 = vpop.xlane.xlu0 %671  ;;  %v621_v20 = vpop.xlane.xlu1 %620 }
 0x255   :  { %v691_v43 = vsel %vm677_vm5, %v621_v20, %v672_v18 }
 0x258   :  { %v670_v21 = vpop.xlane.xlu0 %669  ;;  %v619_v22 = vpop.xlane.xlu1 %618 }
 0x259   :  { %v690_v46 = vsel %vm677_vm5, %v619_v22, %v670_v21 }
 0x25c   :  { %v625_v26 = vpop.xlane.xlu0 %624  ;;  %v676_v29 = vpop.xlane.xlu1 %675 }
 0x25d   :  { %v693_v30 = vsel %vm677_vm5, %v625_v26, %v676_v29 }
 0x25e   :  { %2635 = vmatprep.subr.mxu0 %v693_v30 }
 0x25f   :  { %2636 = vmatpush3.msra.mxu0 %v693_v30 }
 0x260   :  { %v660_v33 = vpop.xlane.xlu0 %659  ;;  %v609_v39 = vpop.xlane.xlu1 %608 }
 0x261   :  { %v685_v51 = vsel %vm677_vm5, %v609_v39, %v660_v33 }
 0x264   :  { %v623_v23 = vpop.xlane.xlu0 %622  ;;  %v607_v19 = vpop.xlane.xlu1 %606 }
 0x268   :  { %v674_v41 = vpop.xlane.xlu0 %673  ;;  %v605_v42 = vpop.xlane.xlu1 %604 }
 0x269   :  { %v692_v38 = vsel %vm677_vm5, %v623_v23, %v674_v41 }
 0x26a   :  { %2637 = vmatprep.subr.mxu0 %v692_v38 }
 0x26b   :  { %2638 = vmatpush3.msra.mxu0 %v692_v38 }
 0x26c   :  { %2639 = vmatprep.subr.mxu0 %v691_v43  ;;  %v658_v44 = vpop.xlane.xlu0 %657  ;;  %v603_v45 = vpop.xlane.xlu1 %602 }
 0x26d   :  { %2640 = vmatpush3.msra.mxu0 %v691_v43  ;;  %v684_v25 = vsel %vm677_vm5, %v607_v19, %v658_v44 }
 0x26e   :  { %2641 = vmatprep.subr.mxu0 %v690_v46 }
 0x26f   :  { %2642 = vmatpush3.msra.mxu0 %v690_v46 }
 0x270   :  { %2643 = vmatprep.subr.mxu0 %v689_v47  ;;  %v656_v24 = vpop.xlane.xlu0 %655  ;;  %v601_v48 = vpop.xlane.xlu1 %600 }
 0x271   :  { %2644 = vmatpush3.msra.mxu0 %v689_v47  ;;  %v683_v36 = vsel %vm677_vm5, %v605_v42, %v656_v24  ;;  %v2740_v42 = vmov 1  }
 0x272   :  { %2645 = vmatprep.subr.mxu0 %v688_v40 }
 0x273   :  { %2646 = vmatpush3.msra.mxu0 %v688_v40 }
 0x274   :  { %2647 = vmatprep.subr.mxu0 %v687_v49  ;;  %v654_v34 = vpop.xlane.xlu0 %653  ;;  %v599_v52 = vpop.xlane.xlu1 %598 }
 0x275   :  { %2648 = vmatpush3.msra.mxu0 %v687_v49  ;;  %v682_v28 = vsel %vm677_vm5, %v603_v45, %v654_v34 }
 0x276   :  { %2649 = vmatprep.subr.mxu0 %v686_v50 }
 0x277   :  { %2650 = vmatpush3.msra.mxu0 %v686_v50 }
 0x278   :  { %2651 = vmatprep.subr.mxu0 %v685_v51  ;;  %v652_v53 = vpop.xlane.xlu0 %651  ;;  %v597_v55 = vpop.xlane.xlu1 %596 }
 0x279   :  { %2652 = vmatpush3.msra.mxu0 %v685_v51  ;;  %v681_v56 = vsel %vm677_vm5, %v601_v48, %v652_v53 }
 0x27a   :  { %2653 = vmatprep.subr.mxu0 %v684_v25 }
 0x27b   :  { %2654 = vmatpush3.msra.mxu0 %v684_v25 }
 0x27c   :  { %2655 = vmatprep.subr.mxu0 %v683_v36  ;;  %v650_v54 = vpop.xlane.xlu0 %649  ;;  %v595_v32 = vpop.xlane.xlu1 %594 }
 0x27d   :  { %2656 = vmatpush3.msra.mxu0 %v683_v36  ;;  %v680_v58 = vsel %vm677_vm5, %v599_v52, %v650_v54 }
 0x27e   :  { %2657 = vmatprep.subr.mxu0 %v682_v28 }
 0x27f   :  { %2658 = vmatpush3.msra.mxu0 %v682_v28 }
 0x280   :  { %2659 = vmatprep.subr.mxu0 %v681_v56  ;;  %v648_v57 = vpop.xlane.xlu0 %647  ;;  %v748_v12 = vpop.permute.xlu1 %747 }
 0x281   :  { %2660 = vmatpush3.msra.mxu0 %v681_v56  ;;  %v679_v59 = vsel %vm677_vm5, %v597_v55, %v648_v57 }
 0x282   :  { %2661 = vmatprep.subr.mxu0 %v680_v58 }
 0x283   :  { %2662 = vmatpush3.msra.mxu0 %v680_v58 }
 0x284   :  { %2663 = vmatprep.subr.mxu0 %v679_v59  ;;  %v646_v35 = vpop.xlane.xlu0 %645  ;;  %v738_v13 = vpop.permute.xlu1 %737 }
 0x285   :  { %2664 = vmatpush3.msra.mxu0 %v679_v59  ;;  %v678_v31 = vsel %vm677_vm5, %v595_v32, %v646_v35 }
 0x286   :  { %2665 = vmatprep.subr.mxu0 %v678_v31 }
 0x287   :  { %2666 = vmatpush3.msra.mxu0 %v678_v31 }
 0x288   :  { %2668 = vmatmul.mubr.f32.vlgmr.msra.gmra.mxu0 %v695_v37  ;;  %2469 = vmatprep.subr.msk.mxu0 %vm870_vm6, %v862_v60  ;;  %v733_v16 = vpop.permute.xlu1 %732 }
 0x289   :  { %2670 = vmatprep.mubr.f32.mxu0 %v696_v61  ;;  %2470 = vmatpush1.msk.msra.mxu0 %vm870_vm6, %v861_v62 }
 0x28a   :  { %905 = vmatprep.subr.mxu0 %v860_v63 }
 0x28b   :  { %906 = vmatpush1.msra.mxu0 %v859_v1  ;;  %v2741_v1 = vmov 683565275  }
 0x28c   :  { %2671 = vmatmul.mubr.f32.gmra.mxu0 %v697_v2  ;;  %907 = vmatprep.subr.mxu0 %v858_v4  ;;  %v743_v14 = vpop.permute.xlu0 %742  ;;  %v723_v26 = vpop.permute.xlu1 %722  ;;  %v2742_v4 = vmov 2475754826  }
 0x28d   :  { %2673 = vmatprep.mubr.f32.mxu0 %v698_v5  ;;  %908 = vmatpush1.msra.mxu0 %v857_v6  ;;  %v2743_v6 = vmov 2131351028  }
 0x290   :  { %2674 = vmatmul.mubr.f32.gmra.mxu0 %v699_v7  ;;  %v728_v18 = vpop.permute.xlu0 %727  ;;  %v713_v59 = vpop.permute.xlu1 %712 }
 0x291   :  { %2676 = vmatprep.mubr.f32.mxu0 %v700_v8  ;;  %v2744_v8 = vmov 2102212464  }
 0x294   :  { %2677 = vmatmul.mubr.f32.gmra.mxu0 %v701_v9  ;;  %v718_v56 = vpop.permute.xlu0 %717 }
 0x295   :  { %941 = vmatprep.mubr.f32.mxu0 %v2739_v0 }
 0x298   :  { %2471 = vmatmul.mubr.msk.f32.vlgmr.msra.gmra.mxu0 %vm3725_vm7, %v855_v10  ;;  %v2745_v10 = vmov 920167782  }
 0x299   :  { %947 = vmatprep.mubr.f32.mxu0 %v2739_v0 }
 0x29c   :  { %2472 = vmatmul.mubr.msk.f32.gmra.mxu0 %vm3725_vm7, %v856_v11 }
 0x29d   :  { %1945 = vmatprep.mubr.f32.mxu0 %v2739_v0 }
 0x348   :  { %v2669_v15 = vpop.f32.mrf.mxu0 }
 0x349   :  { %v3251_v32 = vadd.f32 %v2669_v15, %v718_v56 }
 0x34a   :  { %v816_v17 = vpop.f32.mrf.mxu0 }
 0x34b   :  { %v3253_v37 = vadd.f32 %v816_v17, %v713_v59  ;;  %v2746_v17 = vmov 1326507024  }
 0x34c   :  { %v2672_v20 = vpop.f32.mrf.mxu0 }
 0x34d   :  { %v832_v21 = vadd.f32 %v2672_v20, %v728_v18 }
 0x34e   :  { %v826_v22 = vpop.f32.mrf.mxu0 }
 0x34f   :  { %2013 = vperm.xlu1 %2705, %v832_v21   ;;  %v3226_v30 = vadd.f32 %v826_v22, %v723_v26 }
 0x350   :  { %v2675_v29 = vpop.f32.mrf.mxu0 }
 0x351   :  { %v842_v19 = vadd.f32 %v2675_v29, %v738_v13 }
 0x352   :  { %v836_v33 = vpop.f32.mrf.mxu0 }
 0x353   :  { %v837_v39 = vadd.f32 %v836_v33, %v733_v16  ;;  %2008 = vperm.xlu1 %2705, %v3226_v30  }
 0x354   :  { %v2678_v23 = vpop.f32.mrf.mxu0 }
 0x355   :  { %2018 = vperm.xlu0 %2704, %v837_v39   ;;  %v852_v38 = vadd.f32 %v2678_v23, %v748_v12 }
 0x356   :  { %v846_v41 = vpop.f32.mrf.mxu0 }
 0x357   :  { %2706 = vset.pattern.permute.xlu1 %v2740_v42  ;;  %v3237_v24 = vadd.f32 %v846_v41, %v743_v14 }
 0x358   :  { %v3230_v43 = vpop.f32.mrf.mxu0  ;;  %2057 = vperm.xlu1 %2706, %v842_v19  }
 0x359   :  { %v954_v44 = vand.u32 2147483647, %v3230_v43  ;;  %v957_v45 = vand.u32 2139095040, %v3230_v43  ;;  %2709 = vset.pattern.permute.xlu0 %v2740_v42 }
 0x35a   :  { %v3235_v46 = vpop.f32.mrf.mxu0  ;;  %2065 = vperm.xlu0 %2709, %v852_v38  }
 0x35b   :  { %v958_v47 = vshrl.u32 %v957_v45, 23  ;;  %v961_v40 = vand.u32 8388607, %v954_v44  ;;  %v1058_v48 = vand.u32 2147483647, %v3235_v46  ;;  %v1061_v49 = vand.u32 2139095040, %v3235_v46 }
 0x35c   :  { %v3243_v34 = vpop.f32.mrf.mxu0  ;;  %2707 = vset.pattern.permute.xlu1 %v2738_v3 }
 0x35d   :  { %v2473_v50 = vadd.s32 4294967169, %v958_v47  ;;  %2023 = vperm.xlu1 %2707, %v842_v19   ;;  %v1062_v51 = vshrl.u32 %v1061_v49, 23  ;;  %v1065_v52 = vand.u32 8388607, %v1058_v48  ;;  %v1165_v53 = vand.u32 2139095040, %v3243_v34 }
 0x35e   :  { %2061 = vperm.xlu0 %2709, %v3237_v24   ;;  %v962_v36 = vor.u32 8388608, %v961_v40 }
 0x35f   :  { %v964_v25 = vadd.s32 1, %v2473_v50  ;;  %v2477_v54 = vadd.s32 4294967169, %v1062_v51  ;;  %v1066_v28 = vor.u32 8388608, %v1065_v52  ;;  %v1166_v55 = vshrl.u32 %v1165_v53, 23 }
 0x360   :  { %v3255_v60 = vshll.u32 %v962_v36, 8 }
 0x361   :  { %vm965_vm8 = vcmp.gt.s32.totalorder %v964_v25, 0  ;;  %2708 = vset.pattern.permute.xlu1 %v2740_v42  ;;  %v1068_v58 = vadd.s32 1, %v2477_v54  ;;  %v3257_v61 = vshll.u32 %v1066_v28, 8  ;;  %v2481_v62 = vadd.s32 4294967169, %v1166_v55 }
 0x362   :  { %v966_v57 = vsel %vm965_vm8, %v964_v25, 0  ;;  %2049 = vperm.xlu0 %2709, %v832_v21   ;;  %2053 = vperm.xlu1 %2708, %v837_v39  }
 0x363   :  { %v967_v35 = vshrl.u32 %v966_v57, 5  ;;  %v968_v31 = vand.u32 31, %v966_v57  ;;  %vm1069_vm9 = vcmp.gt.s32.totalorder %v1068_v58, 0  ;;  %v1172_v52 = vadd.s32 1, %v2481_v62 }
 0x364   :  { %v1070_v26 = vsel %vm1069_vm9, %v1068_v58, 0 }
 0x365   :  { %v969_v63 = vsub.s32 32, %v968_v31  ;;  %v971_v2 = vshll.u32 %v2741_v1, %v968_v31  ;;  %v974_v5 = vshll.u32 %v2742_v4, %v968_v31  ;;  %v977_v7 = vshll.u32 %v2743_v6, %v968_v31 }
 0x366   :  { %v980_v9 = vshll.u32 %v2744_v8, %v968_v31  ;;  %v983_v11 = vshll.u32 %v2745_v10, %v968_v31  ;;  %vm986_vm10 = vcmp.lt.s32.totalorder %v967_v35, 1  ;;  %2045 = vperm.xlu0 %2709, %v3226_v30   ;;  %2710 = vset.pattern.permute.xlu1 %v2738_v3  ;;  %vm987_vm11 = vcmp.lt.s32.totalorder %v967_v35, 2 }
 0x367   :  { %v972_v12 = vshrl.u32 %v2742_v4, %v969_v63  ;;  %v975_v13 = vshrl.u32 %v2743_v6, %v969_v63  ;;  %v978_v14 = vshrl.u32 %v2744_v8, %v969_v63  ;;  %2033 = vperm.xlu1 %2710, %v852_v38   ;;  %v970_v15 = vshrl.u32 %v2741_v1, %v969_v63 }
 0x368   :  { %v981_v16 = vshrl.u32 %v2745_v10, %v969_v63  ;;  %v984_v18 = vshrl.u32 %v2746_v17, %v969_v63  ;;  %vm988_vm12 = vcmp.lt.s32.totalorder %v967_v35, 3  ;;  %vm989_vm13 = vcmp.lt.s32.totalorder %v967_v35, 4 }
 0x369   :  { %v973_v20 = vor.u32 %v972_v12, %v971_v2  ;;  %v976_v21 = vor.u32 %v975_v13, %v974_v5  ;;  %v979_v22 = vor.u32 %v978_v14, %v977_v7  ;;  %v1072_v33 = vand.u32 31, %v1070_v26 }
 0x36a   :  { %v982_v29 = vor.u32 %v981_v16, %v980_v9  ;;  %v985_v30 = vor.u32 %v984_v18, %v983_v11  ;;  %2037 = vperm.xlu0 %2709, %v3253_v37   ;;  %v1071_v36 = vshrl.u32 %v1070_v26, 5  ;;  %vm1173_vm4 = vcmp.gt.s32.totalorder %v1172_v52, 0 }
 0x36b   :  { %v990_v39 = vsel %vm986_vm10, %v970_v15, %v973_v20  ;;  %v991_v23 = vsel %vm989_vm13, %v979_v22, 2102212464  ;;  %v994_v19 = vsel %vm986_vm10, %v973_v20, %v976_v21  ;;  %v998_v41 = vsel %vm986_vm10, %v976_v21, %v979_v22  ;;  %2028 = vperm.xlu1 %2710, %v3237_v24  }
 0x36c   :  { %v992_v38 = vsel %vm988_vm12, %v976_v21, %v991_v23  ;;  %v995_v45 = vsel %vm989_vm13, %v982_v29, 920167782  ;;  %v999_v47 = vsel %vm989_vm13, %v985_v30, 1326507024  ;;  %v1073_v40 = vsub.s32 32, %v1072_v33 }
 0x36d   :  { %v993_v49 = vsel %vm987_vm11, %v990_v39, %v992_v38  ;;  %v996_v50 = vsel %vm988_vm12, %v979_v22, %v995_v45  ;;  %v1000_v51 = vsel %vm988_vm12, %v982_v29, %v999_v47  ;;  %v1075_v54 = vshll.u32 %v2741_v1, %v1072_v33 }
 0x36e   :  { %v997_v53 = vsel %vm987_vm11, %v994_v19, %v996_v50  ;;  %v1001_v25 = vsel %vm987_vm11, %v998_v41, %v1000_v51  ;;  %2713 = vset.pattern.permute.xlu0 %v2738_v3  ;;  %v1009_v57 = vmul.u32 %v3255_v60, %v993_v49  ;;  %v1076_v58 = vshrl.u32 %v2742_v4, %v1073_v40 }
 0x36f   :  { %v3287_v24 = vmul.u32.u64.low %v3255_v60, %v1001_v25  ;;  %v3288_v28 = vmul.u32.u64.high %v3255_v60, %v1001_v25, %v3287_v24  ;;  %v3291_v55 = vmul.u32.u64.low %v3255_v60, %v997_v53  ;;  %v3292_v56 = vmul.u32.u64.high %v3255_v60, %v997_v53, %v3291_v55  ;;  %2711 = vset.pattern.permute.xlu1 %v2740_v42 }
 0x370   :  { %v1078_v59 = vshll.u32 %v2742_v4, %v1072_v33  ;;  %v1079_v35 = vshrl.u32 %v2743_v6, %v1073_v40  ;;  %2041 = vperm.xlu1 %2711, %v3251_v32   ;;  %v1081_v31 = vshll.u32 %v2743_v6, %v1072_v33  ;;  %v1082_v62 = vshrl.u32 %v2744_v8, %v1073_v40 }
 0x371   :  { %v1084_v63 = vshll.u32 %v2744_v8, %v1072_v33  ;;  %v1085_v2 = vshrl.u32 %v2745_v10, %v1073_v40  ;;  %v1077_v5 = vor.u32 %v1076_v58, %v1075_v54  ;;  %v1087_v60 = vshll.u32 %v2745_v10, %v1072_v33 }
 0x372   :  { %v1080_v42 = vor.u32 %v1079_v35, %v1078_v59  ;;  %v1088_v7 = vshrl.u32 %v2746_v17, %v1073_v40  ;;  %vm1011_vm14 = vc.u32 %v3288_v28, %v3291_v55  ;;  %v1012_v9 = vadd.s32 1, %v3292_v56 }
 0x373   :  { %v1074_v11 = vshrl.u32 %v2741_v1, %v1073_v40  ;;  %v1083_v12 = vor.u32 %v1082_v62, %v1081_v31  ;;  %v1086_v13 = vor.u32 %v1085_v2, %v1084_v63  ;;  %vm1090_vm15 = vcmp.lt.s32.totalorder %v1071_v36, 1 }
 0x374   :  { %v1089_v14 = vor.u32 %v1088_v7, %v1087_v60  ;;  %vm1091_vm0 = vcmp.lt.s32.totalorder %v1071_v36, 2  ;;  %2712 = vset.pattern.permute.xlu1 %v2738_v3  ;;  %v1013_v15 = vsel %vm1011_vm14, %v1012_v9, %v3292_v56  ;;  %vm1092_vm1 = vcmp.lt.s32.totalorder %v1071_v36, 3 }
 0x375   :  { %vm1093_vm3 = vcmp.lt.s32.totalorder %v1071_v36, 4  ;;  %v1098_v16 = vsel %vm1090_vm15, %v1077_v5, %v1080_v42  ;;  %2003 = vperm.xlu1 %2712, %v3251_v32   ;;  %v1014_v18 = vadd.s32 %v1013_v15, %v1009_v57  ;;  %v1102_v22 = vsel %vm1090_vm15, %v1080_v42, %v1083_v12 }
 0x376   :  { %v1095_v20 = vsel %vm1093_vm3, %v1083_v12, 2102212464  ;;  %v1099_v21 = vsel %vm1093_vm3, %v1086_v13, 920167782  ;;  %v1094_v26 = vsel %vm1090_vm15, %v1074_v11, %v1077_v5  ;;  %v1103_v30 = vsel %vm1093_vm3, %v1089_v14, 1326507024 }
 0x377   :  { %v1100_v29 = vsel %vm1092_vm1, %v1083_v12, %v1099_v21  ;;  %v1015_v33 = vadd.s32 536870912, %v1014_v18  ;;  %v1096_v39 = vsel %vm1092_vm1, %v1080_v42, %v1095_v20  ;;  %v1104_v3 = vsel %vm1092_vm1, %v1086_v13, %v1103_v30  ;;  %v3348_v42 = vpop.f32.mrf.mxu0 }
 0x378   :  { %v1101_v23 = vsel %vm1091_vm0, %v1098_v16, %v1100_v29  ;;  %v1105_v19 = vsel %vm1091_vm0, %v1102_v22, %v1104_v3  ;;  %v1174_v40 = vsel %vm1173_vm4, %v1172_v52, 0  ;;  %v1097_v49 = vsel %vm1091_vm0, %v1094_v26, %v1096_v39 }
 0x379   :  { %v3317_v41 = vmul.u32.u64.low %v3257_v61, %v1101_v23  ;;  %v3318_v38 = vmul.u32.u64.high %v3257_v61, %v1101_v23, %v3317_v41  ;;  %1998 = vperm.xlu1 %2712, %v3253_v37   ;;  %v3322_v32 = vshrl.u32 %v1015_v33, 30  ;;  %v1176_v50 = vand.u32 31, %v1174_v40 }
 0x37a   :  { %v3325_v45 = vmul.u32.u64.low %v3257_v61, %v1105_v19  ;;  %v3326_v47 = vmul.u32.u64.high %v3257_v61, %v1105_v19, %v3325_v45  ;;  %v1162_v51 = vand.u32 2147483647, %v3243_v34  ;;  %v1113_v24 = vmul.u32 %v3257_v61, %v1097_v49 }
 0x37b   :  { %v1116_v53 = vadd.s32 1, %v3318_v38  ;;  %v1177_v25 = vsub.s32 32, %v1176_v50  ;;  %v1017_v54 = vshll.u32 %v3322_v32, 30  ;;  %v1175_v35 = vshrl.u32 %v1174_v40, 5 }
 0x37c   :  { %vm1115_vm5 = vc.u32 %v3326_v47, %v3317_v41  ;;  %v1169_v52 = vand.u32 8388607, %v1162_v51  ;;  %v1179_v61 = vshll.u32 %v2741_v1, %v1176_v50  ;;  %v1182_v31 = vshll.u32 %v2742_v4, %v1176_v50 }
 0x37d   :  { %v1117_v37 = vsel %vm1115_vm5, %v1116_v53, %v3318_v38  ;;  %v1180_v36 = vshrl.u32 %v2742_v4, %v1177_v25  ;;  %v1183_v57 = vshrl.u32 %v2743_v6, %v1177_v25  ;;  %v1186_v58 = vshrl.u32 %v2744_v8, %v1177_v25 }
 0x37e   :  { %v1118_v56 = vadd.s32 %v1117_v37, %v1113_v24  ;;  %v3341_v59 = vsub.s32 %v1014_v18, %v1017_v54  ;;  %v1185_v63 = vshll.u32 %v2743_v6, %v1176_v50  ;;  %v1188_v2 = vshll.u32 %v2744_v8, %v1176_v50 }
 0x37f   :  { %v1189_v5 = vshrl.u32 %v2745_v10, %v1177_v25  ;;  %v1170_v60 = vor.u32 8388608, %v1169_v52  ;;  %v1181_v7 = vor.u32 %v1180_v36, %v1179_v61  ;;  %v1184_v9 = vor.u32 %v1183_v57, %v1182_v31 }
 0x380   :  { %v1119_v62 = vadd.s32 536870912, %v1118_v56  ;;  %v1192_v11 = vshrl.u32 %v2746_v17, %v1177_v25  ;;  %v1187_v13 = vor.u32 %v1186_v58, %v1185_v63  ;;  %v1191_v15 = vshll.u32 %v2745_v10, %v1176_v50  ;;  %v2131_v58 = vld [vmem:[%s3718_s12 + $0x38] sm:$0xff]  ;;  %v2129_v63 = vld [vmem:[%s3718_s12 + $0x28] sm:$0xff] }
 0x381   :  { %v1190_v14 = vor.u32 %v1189_v5, %v1188_v2  ;;  %v1269_v16 = vand.u32 2139095040, %v3348_v42  ;;  %v1020_v18 = vsub.s32 0, %v3341_v59  ;;  %vm1197_vm8 = vcmp.lt.s32.totalorder %v1175_v35, 4  ;;  %2169 = vperm.xlu1 %2712, %v2131_v58  }
 0x382   :  { %v3351_v12 = vshrl.u32 %v1119_v62, 30  ;;  %v1193_v21 = vor.u32 %v1192_v11, %v1191_v15  ;;  %vm1194_vm9 = vcmp.lt.s32.totalorder %v1175_v35, 1  ;;  %v1199_v29 = vsel %vm1197_vm8, %v1187_v13, 2102212464 }
 0x383   :  { %v1203_v22 = vsel %vm1197_vm8, %v1190_v14, 920167782  ;;  %v1202_v30 = vsel %vm1194_vm9, %v1181_v7, %v1184_v9  ;;  %v1210_v33 = vshll.u32 %v1170_v60, 8  ;;  %v1178_v39 = vshrl.u32 %v2741_v1, %v1177_v25 }
 0x384   :  { %v1121_v20 = vshll.u32 %v3351_v12, 30  ;;  %vm1196_vm10 = vcmp.lt.s32.totalorder %v1175_v35, 3  ;;  %v1206_v23 = vsel %vm1194_vm9, %v1184_v9, %v1187_v13  ;;  %v1270_v3 = vshrl.u32 %v1269_v16, 23 }
 0x385   :  { %v2474_v19 = vmin.u32 %v1020_v18, %v3341_v59  ;;  %vm1195_vm11 = vcmp.lt.s32.totalorder %v1175_v35, 2  ;;  %v1204_v38 = vsel %vm1196_vm10, %v1187_v13, %v1203_v22  ;;  %v1207_v45 = vsel %vm1197_vm8, %v1193_v21, 1326507024  ;;  %2159 = vperm.xlu1 %2712, %v2129_v63   ;;  %v2128_v13 = vld [vmem:[%s3718_s12 + $0x20] sm:$0xff]  ;;  %v2126_v22 = vld [vmem:[%s3718_s12 + $0x10] sm:$0xff] }
 0x386   :  { %v3357_v26 = vsub.s32 %v1118_v56, %v1121_v20  ;;  %v1198_v40 = vsel %vm1194_vm9, %v1178_v39, %v1181_v7  ;;  %v1200_v49 = vsel %vm1196_vm10, %v1184_v9, %v1199_v29  ;;  %v1205_v50 = vsel %vm1195_vm11, %v1202_v30, %v1204_v38  ;;  %v2124_v38 = vld [vmem:[%s3718_s12] sm:$0xff] }
 0x387   :  { %v1208_v53 = vsel %vm1196_vm10, %v1190_v14, %v1207_v45  ;;  %v3362_v37 = vmul.u32.u64.low %v1210_v33, %v1205_v50  ;;  %v3363_v56 = vmul.u32.u64.high %v1210_v33, %v1205_v50, %v3362_v37  ;;  %v1201_v36 = vsel %vm1195_vm11, %v1198_v40, %v1200_v49 }
 0x388   :  { %v1124_v54 = vsub.s32 0, %v3357_v26  ;;  %v1209_v24 = vsel %vm1195_vm11, %v1206_v23, %v1208_v53  ;;  %v2485_v57 = vadd.s32 4294967169, %v1270_v3  ;;  %v1022_v35 = vclz %v2474_v19 }
 0x389   :  { %v3366_v25 = vmul.u32.u64.low %v1210_v33, %v1209_v24  ;;  %v3367_v52 = vmul.u32.u64.high %v1210_v33, %v1209_v24, %v3366_v25  ;;  %v1220_v31 = vadd.s32 1, %v3363_v56  ;;  %v1217_v2 = vmul.u32 %v1210_v33, %v1201_v36  ;;  %2154 = vperm.xlu1 %2712, %v2128_v13  }
 0x38a   :  { %v2478_v61 = vmin.u32 %v1124_v54, %v3357_v26  ;;  %v1276_v62 = vadd.s32 1, %v2485_v57  ;;  %v2475_v60 = vadd.s32 4294967294, %v1022_v35  ;;  %v1266_v21 = vand.u32 2147483647, %v3348_v42 }
 0x38b   :  { %vm1219_vm12 = vc.u32 %v3367_v52, %v3362_v37  ;;  %vm956_vm9 = vcmp.lt.s32.totalorder %v3230_v43, 0  ;;  %vm3454_vm10 = vcmp.le.f32.partialorder %v954_v44, 0.7853982  ;;  %vm1060_vm11 = vcmp.lt.s32.totalorder %v3235_v46, 0 }
 0x38c   :  { %v1221_v5 = vsel %vm1219_vm12, %v1220_v31, %v3363_v56  ;;  %vm1277_vm13 = vcmp.gt.s32.totalorder %v1276_v62, 0  ;;  %v1126_v11 = vclz %v2478_v61  ;;  %vm2476_vm14 = vcmp.lt.s32.totalorder %v2475_v60, 0 }
 0x38d   :  { %v1222_v7 = vadd.s32 %v1221_v5, %v1217_v2  ;;  %v1278_v9 = vsel %vm1277_vm13, %v1276_v62, 0  ;;  %v3390_v30 = vsel %vm2476_vm14, 0, %v2475_v60  ;;  %2144 = vperm.xlu1 %2712, %v2126_v22   ;;  %v1273_v3 = vand.u32 8388607, %v1266_v21 }
 0x38e   :  { %v1280_v15 = vand.u32 31, %v1278_v9  ;;  %v2479_v20 = vadd.s32 4294967294, %v1126_v11  ;;  %v1030_v45 = vsub.s32 4294967266, %v3390_v30  ;;  %v1279_v53 = vshrl.u32 %v1278_v9, 5 }
 0x38f   :  { %v1223_v14 = vadd.s32 536870912, %v1222_v7  ;;  %v1274_v35 = vor.u32 8388608, %v1273_v3  ;;  %v1026_v62 = vsub.s32 32, %v3390_v30  ;;  %vm1164_vm12 = vcmp.lt.s32.totalorder %v3243_v34, 0 }
 0x390   :  { %v1281_v18 = vsub.s32 32, %v1280_v15  ;;  %vm2480_vm15 = vcmp.lt.s32.totalorder %v2479_v20, 0  ;;  %v1283_v49 = vshll.u32 %v2741_v1, %v1280_v15  ;;  %v1286_v50 = vshll.u32 %v2742_v4, %v1280_v15 }
 0x391   :  { %v3383_v16 = vshrl.u32 %v1223_v14, 30  ;;  %v1289_v54 = vshll.u32 %v2743_v6, %v1280_v15  ;;  %v1292_v24 = vshll.u32 %v2744_v8, %v1280_v15  ;;  %v3409_v25 = vsel %vm2480_vm15, 0, %v2479_v20  ;;  %2134 = vperm.xlu1 %2712, %v2124_v38  }
 0x392   :  { %v1284_v39 = vshrl.u32 %v2742_v4, %v1281_v18  ;;  %v1287_v23 = vshrl.u32 %v2743_v6, %v1281_v18  ;;  %v1290_v19 = vshrl.u32 %v2744_v8, %v1281_v18  ;;  %v1293_v56 = vshrl.u32 %v2745_v10, %v1281_v18 }
 0x393   :  { %v1225_v29 = vshll.u32 %v3383_v16, 30  ;;  %v1295_v63 = vshll.u32 %v2745_v10, %v1280_v15  ;;  %v1296_v6 = vshrl.u32 %v2746_v17, %v1281_v18  ;;  %v1031_v8 = vadd.s32 127, %v1030_v45 }
 0x394   :  { %v1285_v57 = vor.u32 %v1284_v39, %v1283_v49  ;;  %v1288_v58 = vor.u32 %v1287_v23, %v1286_v50  ;;  %v1291_v61 = vor.u32 %v1290_v19, %v1289_v54  ;;  %v1294_v31 = vor.u32 %v1293_v56, %v1292_v24 }
 0x395   :  { %v3392_v33 = vsub.s32 %v1222_v7, %v1225_v29  ;;  %v1134_v2 = vsub.s32 4294967266, %v3409_v25  ;;  %vm1298_vm0 = vcmp.lt.s32.totalorder %v1279_v53, 1  ;;  %vm1299_vm1 = vcmp.lt.s32.totalorder %v1279_v53, 2 }
 0x396   :  { %v1297_v60 = vor.u32 %v1296_v6, %v1295_v63  ;;  %vm1301_vm3 = vcmp.lt.s32.totalorder %v1279_v53, 4  ;;  %v1306_v7 = vsel %vm1298_vm0, %v1285_v57, %v1288_v58  ;;  %v1282_v9 = vshrl.u32 %v2741_v1, %v1281_v18 }
 0x397   :  { %v1228_v40 = vsub.s32 0, %v3392_v33  ;;  %vm1300_vm4 = vcmp.lt.s32.totalorder %v1279_v53, 3  ;;  %v1303_v11 = vsel %vm1301_vm3, %v1291_v61, 2102212464  ;;  %v1307_v13 = vsel %vm1301_vm3, %v1294_v31, 920167782 }
 0x398   :  { %v1308_v14 = vsel %vm1300_vm4, %v1291_v61, %v1307_v13  ;;  %v1310_v10 = vsel %vm1298_vm0, %v1288_v58, %v1291_v61  ;;  %v1311_v17 = vsel %vm1301_vm3, %v1297_v60, 1326507024  ;;  %v1314_v29 = vshll.u32 %v1274_v35, 8 }
 0x399   :  { %v2482_v36 = vmin.u32 %v1228_v40, %v3392_v33  ;;  %v1309_v20 = vsel %vm1299_vm1, %v1306_v7, %v1308_v14  ;;  %v1312_v22 = vsel %vm1300_vm4, %v1294_v31, %v1311_v17  ;;  %v1010_v39 = vadd.s32 %v3291_v55, %v3288_v28 }
 0x39a   :  { %v1302_v3 = vsel %vm1298_vm0, %v1282_v9, %v1285_v57  ;;  %v1304_v1 = vsel %vm1300_vm4, %v1288_v58, %v1303_v11  ;;  %v1313_v18 = vsel %vm1299_vm1, %v1310_v10, %v1312_v22  ;;  %v1032_v45 = vshll.u32 %v1031_v8, 23 }
 0x39b   :  { %v1230_v4 = vclz %v2482_v36  ;;  %v3424_v19 = vmul.u32.u64.low %v1314_v29, %v1309_v20  ;;  %v3425_v38 = vmul.u32.u64.high %v1314_v29, %v1309_v20, %v3424_v19  ;;  %v1135_v40 = vadd.s32 127, %v1134_v2 }
 0x39c   :  { %v1028_v49 = vshrl.u32 %v1010_v39, %v1026_v62  ;;  %v3428_v50 = vmul.u32.u64.low %v1314_v29, %v1313_v18  ;;  %v3429_v54 = vmul.u32.u64.high %v1314_v29, %v1313_v18, %v3428_v50  ;;  %v1130_v24 = vsub.s32 32, %v3409_v25 }
 0x39d   :  { %v2483_v5 = vadd.s32 4294967294, %v1230_v4  ;;  %v1305_v28 = vsel %vm1299_vm1, %v1302_v3, %v1304_v1  ;;  %v1027_v55 = vshll.u32 %v3341_v59, %v3390_v30  ;;  %v1324_v36 = vadd.s32 1, %v3425_v38 }
 0x39e   :  { %v1033_v57 = vor.u32 4788187, %v1032_v45  ;;  %v1114_v58 = vadd.s32 %v3317_v41, %v3326_v47  ;;  %v1136_v35 = vshll.u32 %v1135_v40, 23  ;;  %v1321_v62 = vmul.u32 %v1314_v29, %v1305_v28 }
 0x39f   :  { %vm2484_vm5 = vcmp.lt.s32.totalorder %v2483_v5, 0  ;;  %v1029_v31 = vor.u32 %v1028_v49, %v1027_v55  ;;  %vm1323_vm8 = vc.u32 %v3429_v54, %v3424_v19  ;;  %v1218_v53 = vadd.s32 %v3362_v37, %v3367_v52 }
 0x3a0   :  { %v1233_v15 = vsel %vm2484_vm5, 0, %v2483_v5  ;;  %v1132_v4 = vshrl.u32 %v1114_v58, %v1130_v24  ;;  %v1325_v59 = vsel %vm1323_vm8, %v1324_v36, %v3425_v38  ;;  %v1034_v6 = vand.u32 2147483647, %v1033_v57 }
 0x3a1   :  { %v1238_v23 = vsub.s32 4294967266, %v1233_v15  ;;  %v1234_v61 = vsub.s32 32, %v1233_v15  ;;  %v1326_v30 = vadd.s32 %v1325_v59, %v1321_v62  ;;  %v1131_v8 = vshll.u32 %v3357_v26, %v3409_v25 }
 0x3a2   :  { %v1137_v41 = vor.u32 4788187, %v1136_v35  ;;  %v1036_v5 = vcvt.s32.f32 %v1029_v31  ;;  %v1235_v7 = vshll.u32 %v3392_v33, %v1233_v15  ;;  %vm3467_vm14 = vcmp.le.f32.partialorder %v1058_v48, 0.7853982 }
 0x3a3   :  { %v1239_v56 = vadd.s32 127, %v1238_v23  ;;  %v1236_v47 = vshrl.u32 %v1218_v53, %v1234_v61  ;;  %v1327_v2 = vadd.s32 536870912, %v1326_v30  ;;  %v1133_v60 = vor.u32 %v1132_v4, %v1131_v8 }
 0x3a4   :  { %v1037_v13 = vmul.f32 %v1036_v5, %v1034_v6  ;;  %v1138_v37 = vand.u32 2147483647, %v1137_v41  ;;  %vm3480_vm15 = vcmp.le.f32.partialorder %v1162_v51, 0.7853982  ;;  %v1040_v31 = vsub.s32 4, %v3322_v32 }
 0x3a5   :  { %v1240_v63 = vshll.u32 %v1239_v56, 23  ;;  %v3446_v11 = vshrl.u32 %v1327_v2, 30  ;;  %v1237_v52 = vor.u32 %v1236_v47, %v1235_v7  ;;  %v1140_v10 = vcvt.s32.f32 %v1133_v60 }
 0x3a6   :  { %v1038_v22 = vxor.u32 2147483648, %v1037_v13  ;;  %v1322_v56 = vadd.s32 %v3424_v19, %v3429_v54  ;;  %v1144_v51 = vsub.s32 4, %v3351_v12  ;;  %v1248_v53 = vsub.s32 4, %v3383_v16 }
 0x3a7   :  { %v1241_v9 = vor.u32 4788187, %v1240_v63  ;;  %v1329_v14 = vshll.u32 %v3446_v11, 30  ;;  %v1141_v26 = vmul.f32 %v1140_v10, %v1138_v37  ;;  %v1244_v25 = vcvt.s32.f32 %v1237_v52 }
 0x3a8   :  { %v1039_v33 = vsel %vm956_vm9, %v1038_v22, %v1037_v13  ;;  %v1041_v59 = vsel %vm956_vm9, %v1040_v31, %v3322_v32  ;;  %v1145_v6 = vsel %vm1060_vm11, %v1144_v51, %v3351_v12  ;;  %vm1268_vm0 = vcmp.lt.s32.totalorder %v3348_v42, 0 }
 0x3a9   :  { %v1242_v17 = vand.u32 2147483647, %v1241_v9  ;;  %v1330_v20 = vsub.s32 %v1326_v30, %v1329_v14  ;;  %v1142_v15 = vxor.u32 2147483648, %v1141_v26  ;;  %v1042_v38 = vsel %vm3454_vm10, %v3230_v43, %v1039_v33 }
 0x3aa   :  { %2714 = vcosq.f32 %v1042_v38  ;;  %v1352_v41 = vsub.s32 4, %v3446_v11  ;;  %v1043_v2 = vsel %vm3454_vm10, 0, %v1041_v59  ;;  %v1249_v32 = vsel %vm1164_vm12, %v1248_v53, %v3383_v16 }
 0x3ab   :  { %v1332_v29 = vsub.s32 0, %v1330_v20  ;;  %v1245_v39 = vmul.f32 %v1244_v25, %v1242_v17  ;;  %v1143_v40 = vsel %vm1060_vm11, %v1142_v15, %v1141_v26  ;;  %2716 = vsinq.f32 %v1042_v38 }
 0x3ac   :  { %v1146_v24 = vsel %vm3467_vm14, %v3235_v46, %v1143_v40  ;;  %vm3509_vm1 = vcmp.le.f32.partialorder %v1266_v21, 0.7853982  ;;  %v1147_v60 = vsel %vm3467_vm14, 0, %v1145_v6  ;;  %v1463_v16 = vand.u32 3, %v1043_v2 }
 0x3ad   :  { %v2486_v23 = vmin.u32 %v1332_v29, %v1330_v20  ;;  %v1246_v18 = vxor.u32 2147483648, %v1245_v39  ;;  %2718 = vcosq.f32 %v1146_v24  ;;  %v1251_v21 = vsel %vm3480_vm15, 0, %v1249_v32 }
 0x3ae   :  { %2720 = vsinq.f32 %v1146_v24  ;;  %v1353_v37 = vsel %vm1268_vm0, %v1352_v41, %v3446_v11  ;;  %v1566_v14 = vand.u32 3, %v1147_v60  ;;  %vm3726_vm3 = vweird.f32 %v3230_v43 }
 0x3af   :  { %v1334_v3 = vclz %v2486_v23  ;;  %v1247_v49 = vsel %vm1164_vm12, %v1246_v18, %v1245_v39  ;;  %v1255_v22 = vadd.s32 3, %v1251_v21  ;;  %v1355_v26 = vsel %vm3509_vm1, 0, %v1353_v37 }
 0x3b0   :  { %v1250_v36 = vsel %vm3480_vm15, %v3243_v34, %v1247_v49  ;;  %vm1464_vm4 = vcmp.lt.s32.totalorder %v1463_v16, 2  ;;  %vm1465_vm5 = vcmp.eq.s32.totalorder %v1463_v16, 0  ;;  %vm3727_vm8 = vweird.f32 %v3235_v46 }
 0x3b1   :  { %v2487_v45 = vadd.s32 4294967294, %v1334_v3  ;;  %2722 = vcosq.f32 %v1250_v36  ;;  %v1669_v11 = vand.u32 3, %v1251_v21  ;;  %v1151_v39 = vadd.s32 3, %v1147_v60 }
 0x3b2   :  { %2724 = vsinq.f32 %v1250_v36  ;;  %vm1468_vm9 = vcmp.eq.s32.totalorder %v1463_v16, 2  ;;  %vm1568_vm10 = vcmp.eq.s32.totalorder %v1566_v14, 0  ;;  %vm1571_vm11 = vcmp.eq.s32.totalorder %v1566_v14, 2 }
 0x3b3   :  { %vm2488_vm13 = vcmp.lt.s32.totalorder %v2487_v45, 0  ;;  %v1359_v1 = vadd.s32 3, %v1355_v26  ;;  %v1256_v18 = vand.u32 3, %v1255_v22  ;;  %vm1567_vm12 = vcmp.lt.s32.totalorder %v1566_v14, 2  ;;  %v1798_v22 = vld [vmem:[%s3719_s9 + $0x8] sm:$0xff] }
 0x3b4   :  { %v1337_v50 = vsel %vm2488_vm13, 0, %v2487_v45  ;;  %vm1671_vm13 = vcmp.eq.s32.totalorder %v1669_v11, 0  ;;  %vm1674_vm14 = vcmp.eq.s32.totalorder %v1669_v11, 2  ;;  %v1152_v40 = vand.u32 3, %v1151_v39  ;;  %v2130_v39 = vld [vmem:[%s3718_s12 + $0x30] sm:$0xff] }
 0x3b5   :  { %v1338_v28 = vsub.s32 32, %v1337_v50  ;;  %v1342_v55 = vsub.s32 4294967266, %v1337_v50  ;;  %v1339_v57 = vshll.u32 %v1330_v20, %v1337_v50  ;;  %v1047_v44 = vadd.s32 3, %v1043_v2  ;;  %2164 = vperm.xlu0 %2713, %v2130_v39  }
 0x3b6   :  { %vm1254_vm15 = vweird.f32 %v3243_v34 }
 0x3b7   :  { %v1340_v58 = vshrl.u32 %v1322_v56, %v1338_v28  ;;  %v1343_v35 = vadd.s32 127, %v1342_v55  ;;  %v3493_v30 = vpop.eup %2714  ;;  %v1772_v56 = vand.u32 3, %v1355_v26  ;;  %v1360_v55 = vand.u32 3, %v1359_v1  ;;  %v1801_v26 = vld [vmem:[%s3719_s9 + $0x20] sm:$0xff]  ;;  %v1846_v1 = vpop.permute.xlu1 %1845 }
 0x3b8   :  { %v3500_v47 = vpop.eup %2716  ;;  %v1054_v20 = vxor.u32 2147483648, %v3493_v30 }
 0x3b9   :  { %v1341_v61 = vor.u32 %v1340_v58, %v1339_v57  ;;  %v1344_v19 = vshll.u32 %v1343_v35, 23  ;;  %v1051_v17 = vxor.u32 2147483648, %v3500_v47  ;;  %v1048_v58 = vand.u32 3, %v1047_v44  ;;  %v1851_v44 = vpop.permute.xlu0 %1850 }
 0x3ba   :  { %v3518_v9 = vpop.eup %2718  ;;  %v1470_v3 = vsel %vm1468_vm9, %v1054_v20, %v3500_v47  ;;  %vm1258_vm9 = vcmp.eq.s32.totalorder %v1256_v18, 0  ;;  %vm1365_vm2 = vcmp.eq.s32.totalorder %v1360_v55, 2  ;;  %vm1361_vm7 = vcmp.lt.s32.totalorder %v1360_v55, 2 }
 0x3bb   :  { %v1345_v54 = vor.u32 4788187, %v1344_v19  ;;  %v1348_v4 = vcvt.s32.f32 %v1341_v61  ;;  %v3520_v13 = vpop.eup %2720  ;;  %v1158_v29 = vxor.u32 2147483648, %v3518_v9  ;;  %v1467_v15 = vsel %vm1465_vm5, %v3493_v30, %v1051_v17 }
 0x3bc   :  { %v1155_v25 = vxor.u32 2147483648, %v3520_v13  ;;  %v1471_v49 = vsel %vm1464_vm4, %v1467_v15, %v1470_v3  ;;  %vm1257_vm5 = vcmp.lt.s32.totalorder %v1256_v18, 2  ;;  %vm1154_vm4 = vcmp.eq.s32.totalorder %v1152_v40, 0  ;;  %v2125_v15 = vld [vmem:[%s3718_s12 + $0x8] sm:$0xff] }
 0x3bd   :  { %v1346_v62 = vand.u32 2147483647, %v1345_v54  ;;  %v1573_v45 = vsel %vm1571_vm11, %v1158_v29, %v3520_v13  ;;  %v1472_v36 = vsel %vm3726_vm3, nan, %v1471_v49  ;;  %vm1786_vm11 = vcmask 1040384  }
 0x3be   :  { %v2723_v52 = vpop.eup %2722  ;;  %v1570_v38 = vsel %vm1568_vm10, %v3518_v9, %v1155_v25  ;;  %vm1261_vm10 = vcmp.eq.s32.totalorder %v1256_v18, 2  ;;  %vm1157_vm3 = vcmp.eq.s32.totalorder %v1152_v40, 2  ;;  %v1156_v60 = vsel %vm1154_vm4, %v3518_v9, %v1155_v25  ;;  %v1802_v25 = vld [vmem:[%s3719_s9 + $0x28] sm:$0xff]  ;;  %v1841_v18 = vpop.permute.xlu1 %1840 }
 0x3bf   :  { %v1349_v63 = vmul.f32 %v1348_v4, %v1346_v62  ;;  %v2725_v10 = vpop.eup %2724  ;;  %v1262_v33 = vxor.u32 2147483648, %v2723_v52  ;;  %v1574_v28 = vsel %vm1567_vm12, %v1570_v38, %v1573_v45  ;;  %vm1777_vm12 = vcmp.eq.s32.totalorder %v1772_v56, 2 }
 0x3c0   :  { %v1259_v23 = vxor.u32 2147483648, %v2725_v10  ;;  %v1575_v19 = vsel %vm3727_vm8, nan, %v1574_v28  ;;  %vm1050_vm8 = vcmp.eq.s32.totalorder %v1048_v58, 0  ;;  %v1787_v16 = vrot.slane %v1472_v36, 7 }
 0x3c1   :  { %v1350_v8 = vxor.u32 2147483648, %v1349_v63  ;;  %v1676_v24 = vsel %vm1674_vm14, %v1262_v33, %v2725_v10  ;;  %vm1362_vm14 = vcmp.eq.s32.totalorder %v1360_v55, 0  ;;  %v1263_v31 = vsel %vm1261_vm10, %v1262_v33, %v2725_v10  ;;  %v2127_v33 = vld [vmem:[%s3718_s12 + $0x18] sm:$0xff] }
 0x3c2   :  { %v1673_v50 = vsel %vm1671_vm13, %v2723_v52, %v1259_v23  ;;  %vm1774_vm13 = vcmp.eq.s32.totalorder %v1772_v56, 0  ;;  %v1260_v53 = vsel %vm1258_vm9, %v2723_v52, %v1259_v23  ;;  %vm1053_vm10 = vcmp.eq.s32.totalorder %v1048_v58, 2  ;;  %2149 = vperm.xlu0 %2713, %v2127_v33   ;;  %v1826_v38 = vpop.permute.xlu1 %1825 }
 0x3c3   :  { %v1351_v12 = vsel %vm1268_vm0, %v1350_v8, %v1349_v63  ;;  %vm1358_vm0 = vweird.f32 %v3348_v42  ;;  %v1264_v32 = vsel %vm1257_vm5, %v1260_v53, %v1263_v31  ;;  %v1788_v5 = vrot.slane %v1575_v19, 7 }
 0x3c4   :  { %v1354_v7 = vsel %vm3509_vm1, %v3348_v42, %v1351_v12  ;;  %vm1670_vm1 = vcmp.lt.s32.totalorder %v1669_v11, 2  ;;  %v1052_v37 = vsel %vm1050_vm8, %v3493_v30, %v1051_v17  ;;  %v1055_v52 = vsel %vm1053_vm10, %v1054_v20, %v3500_v47  ;;  %v1797_v47 = vld [vmem:[%s3719_s9] sm:$0xff]  ;;  %v1804_v11 = vld [vmem:[%s3719_s9 + $0x38] sm:$0xff] }
 0x3c5   :  { %2726 = vcosq.f32 %v1354_v7  ;;  %v1677_v57 = vsel %vm1670_vm1, %v1673_v50, %v1676_v24  ;;  %vm1773_vm1 = vcmp.lt.s32.totalorder %v1772_v56, 2  ;;  %v1265_v10 = vsel %vm1254_vm15, nan, %v1264_v32  ;;  %v1836_v50 = vpop.permute.xlu0 %1835 }
 0x3c6   :  { %2728 = vsinq.f32 %v1354_v7  ;;  %v1678_v51 = vsel %vm1254_vm15, nan, %v1677_v57  ;;  %v1159_v7 = vsel %vm1157_vm3, %v1158_v29, %v3520_v13  ;;  %v1795_v30 = vsel %vm1786_vm11, %v1265_v10, %v1787_v16  ;;  %v1803_v29 = vld [vmem:[%s3719_s9 + $0x30] sm:$0xff]  ;;  %2139 = vperm.xlu0 %2713, %v2125_v15   ;;  %v3636_v45 = vpop.permute.xlu1 %1820 }
 0x3c7   :  { %v1789_v41 = vrot.slane %v1678_v51, 7  ;;  %vm3736_vm3 = vweird.f32 %v3235_v46  ;;  %vm3737_vm8 = vweird.f32 %v3230_v43  ;;  %v1799_v46 = vld [vmem:[%s3719_s9 + $0x10] sm:$0xff]  ;;  %v1800_v43 = vld [vmem:[%s3719_s9 + $0x18] sm:$0xff]  ;;  %v20_v23 = vstv %s3720_s14 }
 0x3c8   :  { %21 = vst [vmem:[#allocation2] sm:$0x1] %v20_v23 }
 0x3c9   :  { %v1790_v9 = vsel %vm1786_vm11, %v1787_v16, %v1789_v41  ;;  %v1831_v55 = vpop.permute.xlu0 %1830 }
 0x3cf   :  { %v2326_v3 = vld [vmem:[#allocation2] sm:$0x1] }
 0x3d0   :  { %2329 = vperm.xlu0 %2713, %v2326_v3  }
 0x3d2   :  { %v2727_v48 = vpop.eup %2726 }
 0x3d3   :  { %v2729_v35 = vpop.eup %2728  ;;  %v1366_v61 = vxor.u32 2147483648, %v2727_v48 }
 0x3d4   :  { %v1363_v54 = vxor.u32 2147483648, %v2729_v35 }
 0x3d5   :  { %v1779_v62 = vsel %vm1777_vm12, %v1366_v61, %v2729_v35  ;;  %v1367_v4 = vsel %vm1365_vm2, %v1366_v61, %v2729_v35  ;;  %vm1153_vm2 = vcmp.lt.s32.totalorder %v1152_v40, 2  ;;  %v3638_v40 = vpop.permute.xlu1 %2013  ;;  %v1816_v35 = vpop.permute.xlu0 %1815 }
 0x3d6   :  { %v1776_v63 = vsel %vm1774_vm13, %v2727_v48, %v1363_v54  ;;  %v1364_v59 = vsel %vm1362_vm14, %v2727_v48, %v1363_v54  ;;  %v1160_v42 = vsel %vm1153_vm2, %v1156_v60, %v1159_v7  ;;  %vm3746_vm14 = vcmask 523264  }
 0x3d7   :  { %v1780_v6 = vsel %vm1773_vm1, %v1776_v63, %v1779_v62  ;;  %v1368_v8 = vsel %vm1361_vm7, %v1364_v59, %v1367_v4  ;;  %vm1049_vm7 = vcmp.lt.s32.totalorder %v1048_v58, 2  ;;  %v1161_v34 = vsel %vm3736_vm3, nan, %v1160_v42  ;;  %vm3747_vm1 = vmmov %vm3746_vm14 }
 0x3d8   :  { %v1781_v2 = vsel %vm1358_vm0, nan, %v1780_v6  ;;  %v1369_v21 = vsel %vm1358_vm0, nan, %v1368_v8  ;;  %v1056_v17 = vsel %vm1049_vm7, %v1052_v37, %v1055_v52  ;;  %vm3748_vm10 = vmmov %vm3747_vm1 }
 0x3d9   :  { %v1791_v12 = vrot.slane %v1781_v2, 7  ;;  %v1796_v13 = vsel %vm1786_vm11, %v1369_v21, %v1788_v5  ;;  %v1057_v20 = vsel %vm3737_vm8, nan, %v1056_v17  ;;  %v3640_v49 = vpop.permute.xlu1 %2008  ;;  %v2019_v54 = vpop.permute.xlu0 %2018  ;;  %vm3749_vm2 = vmmov %vm3747_vm1 }
 0x3da   :  { %vm3750_vm7 = vmmov %vm3747_vm1 }
 0x3db   :  { %v1792_v14 = vsel %vm1786_vm11, %v1788_v5, %v1791_v12  ;;  %vm3751_vm3 = vmmov %vm3747_vm1 }
 0x3dc   :  { %2505 = vmatprep.subr.msk.mxu0 %vm870_vm6, %v1792_v14  ;;  %vm3752_vm8 = vmmov %vm3747_vm1 }
 0x3dd   :  { %2506 = vmatpush1.msk.msra.mxu0 %vm870_vm6, %v1790_v9  ;;  %vm3738_vm6 = vcmask 146432   ;;  %v2058_v28 = vpop.permute.xlu1 %2057  ;;  %v2066_v53 = vpop.permute.xlu0 %2065 }
 0x3de   :  { %1909 = vmatprep.subr.mxu0 %v1796_v13  ;;  %vm3739_vm15 = vmmov %vm3738_vm6 }
 0x3df   :  { %1910 = vmatpush1.msra.mxu0 %v1795_v30  ;;  %vm3740_vm0 = vmmov %vm3738_vm6 }
 0x3e0   :  { %1911 = vmatprep.subr.mxu0 %v1161_v34  ;;  %vm3741_vm5 = vmmov %vm3740_vm0 }
 0x3e1   :  { %1912 = vmatpush1.msra.mxu0 %v1057_v20  ;;  %vm3742_vm9 = vmmov %vm3740_vm0  ;;  %v2024_v58 = vpop.permute.xlu1 %2023  ;;  %v2062_v41 = vpop.permute.xlu0 %2061 }
 0x3e2   :  { %2507 = vmatmul.mubr.msk.f32.vlgmr.msra.gmra.mxu0 %vm3738_vm6, %v1797_v47  ;;  %vm3743_vm4 = vmmov %vm3740_vm0 }
 0x3e3   :  { %1951 = vmatprep.mubr.f32.mxu0 %v2739_v0  ;;  %vm3744_vm13 = vmmov %vm3740_vm0 }
 0x3e4   :  { %vm3745_vm12 = vmmov %vm3740_vm0 }
 0x3e5   :  { %v2054_v51 = vpop.permute.xlu1 %2053  ;;  %v2050_v52 = vpop.permute.xlu0 %2049  ;;  %vm3753_vm6 = vmmov %vm3747_vm1 }
 0x3e6   :  { %2508 = vmatmul.mubr.msk.f32.gmra.mxu0 %vm3739_vm15, %v1798_v22  ;;  %vm3754_vm15 = vmmov %vm3747_vm1 }
 0x3e7   :  { %1957 = vmatprep.mubr.f32.mxu0 %v2739_v0 }
 0x3e9   :  { %v2034_v59 = vpop.permute.xlu1 %2033  ;;  %v2046_v39 = vpop.permute.xlu0 %2045 }
 0x3ea   :  { %2509 = vmatmul.mubr.msk.f32.gmra.mxu0 %vm3740_vm0, %v1799_v46  ;;  %vm2424_vm0 = vcmp.lt.s32.totalorder %v573_v27, 128 }
 0x3eb   :  { %1963 = vmatprep.mubr.f32.mxu0 %v2739_v0 }
 0x3ed   :  { %v2029_v32 = vpop.permute.xlu1 %2028 }
 0x3ee   :  { %2510 = vmatmul.mubr.msk.f32.gmra.mxu0 %vm3741_vm5, %v1800_v43 }
 0x3ef   :  { %1969 = vmatprep.mubr.f32.mxu0 %v2739_v0 }
 0x3f1   :  { %v2042_v9 = vpop.permute.xlu1 %2041 }
 0x3f2   :  { %2511 = vmatmul.mubr.msk.f32.gmra.mxu0 %vm3742_vm9, %v1801_v26 }
 0x3f3   :  { %1975 = vmatprep.mubr.f32.mxu0 %v2739_v0 }
 0x3f5   :  { %v2004_v3 = vpop.permute.xlu1 %2003 }
 0x3f6   :  { %2512 = vmatmul.mubr.msk.f32.gmra.mxu0 %vm3743_vm4, %v1802_v25 }
 0x3f7   :  { %1981 = vmatprep.mubr.f32.mxu0 %v2739_v0 }
 0x3fa   :  { %2513 = vmatmul.mubr.msk.f32.gmra.mxu0 %vm3744_vm13, %v1803_v29 }
 0x3fb   :  { %1987 = vmatprep.mubr.f32.mxu0 %v2739_v0 }
 0x3fe   :  { %2514 = vmatmul.mubr.msk.f32.gmra.mxu0 %vm3745_vm12, %v1804_v11 }
 0x4a2   :  { %v3642_v24 = vpop.f32.mrf.mxu0 }
 0x4a4   :  { %v3644_v56 = vpop.f32.mrf.mxu0 }
 0x4a6   :  { %v1953_v48 = vpop.f32.mrf.mxu0 }
 0x4a8   :  { %v1955_v36 = vpop.f32.mrf.mxu0 }
 0x4aa   :  { %v1959_v57 = vpop.f32.mrf.mxu0 }
 0x4ab   :  { %v1960_v23 = vadd.f32 %v1959_v57, %v1826_v38 }
 0x4ac   :  { %v1961_v61 = vpop.f32.mrf.mxu0 }
 0x4ad   :  { %v1962_v25 = vadd.f32 %v1961_v61, %v1826_v38  ;;  %v1948_v38 = vadd.f32 %v3642_v24, %v1816_v35  ;;  %v2088_v57 = vadd.f32 %v3640_v49, %v1960_v23 }
 0x4ae   :  { %v1965_v19 = vpop.f32.mrf.mxu0 }
 0x4af   :  { %v1966_v46 = vadd.f32 %v1965_v19, %v1831_v55  ;;  %v2089_v61 = vadd.f32 %v2046_v39, %v1962_v25 }
 0x4b0   :  { %v1967_v31 = vpop.f32.mrf.mxu0 }
 0x4b1   :  { %v1968_v47 = vadd.f32 %v1967_v31, %v1831_v55 }
 0x4b2   :  { %v1971_v62 = vpop.f32.mrf.mxu0 }
 0x4b3   :  { %v1972_v30 = vadd.f32 %v1971_v62, %v1836_v50 }
 0x4b4   :  { %v1973_v4 = vpop.f32.mrf.mxu0 }
 0x4b5   :  { %v1974_v42 = vadd.f32 %v1973_v4, %v1836_v50  ;;  %v2092_v33 = vadd.f32 %v2019_v54, %v1972_v30  ;;  %v1954_v50 = vadd.f32 %v1953_v48, %v3636_v45  ;;  %v2105_v4 = vmax.f32 %v2089_v61, 0.0 }
 0x4b6   :  { %v1977_v63 = vpop.f32.mrf.mxu0 }
 0x4b7   :  { %v1978_v14 = vadd.f32 %v1977_v63, %v1841_v18  ;;  %v2093_v29 = vadd.f32 %v2054_v51, %v1974_v42  ;;  %v2108_v54 = vmax.f32 %v2092_v33, 0.0  ;;  %v2038_v51 = vpop.permute.xlu0 %2037 }
 0x4b8   :  { %v1979_v6 = vpop.f32.mrf.mxu0 }
 0x4b9   :  { %v1980_v21 = vadd.f32 %v1979_v6, %v1841_v18  ;;  %v2094_v43 = vadd.f32 %v2024_v58, %v1978_v14  ;;  %v2091_v18 = vadd.f32 %v2050_v52, %v1968_v47  ;;  %v1950_v58 = vadd.f32 %v3644_v56, %v1816_v35  ;;  %v2117_v6 = vld [vmem:[%s3721_s11 + $0x8] sm:$0xff] }
 0x4ba   :  { %v1983_v8 = vpop.f32.mrf.mxu0  ;;  %v2109_v19 = vmax.f32 %v2093_v29, 0.0 }
 0x4bb   :  { %v1984_v7 = vadd.f32 %v1983_v8, %v1846_v1  ;;  %v2095_v20 = vadd.f32 %v2058_v28, %v1980_v21  ;;  %v2090_v28 = vadd.f32 %v3638_v40, %v1966_v46  ;;  %v2110_v55 = vmax.f32 %v2094_v43, 0.0  ;;  %v1999_v40 = vpop.permute.xlu1 %1998  ;;  %v2118_v8 = vld [vmem:[%s3721_s11 + $0x10] sm:$0xff] }
 0x4bc   :  { %v1985_v2 = vpop.f32.mrf.mxu0  ;;  %v2107_v31 = vmax.f32 %v2091_v18, 0.0  ;;  %v2085_v62 = vadd.f32 %v2038_v51, %v1950_v58  ;;  %v2084_v56 = vadd.f32 %v1999_v40, %v1948_v38 }
 0x4bd   :  { %v1986_v12 = vadd.f32 %v1985_v2, %v1846_v1  ;;  %v2096_v34 = vadd.f32 %v2029_v32, %v1984_v7  ;;  %v1956_v1 = vadd.f32 %v1955_v36, %v3636_v45  ;;  %v2086_v45 = vadd.f32 %v2004_v3, %v1954_v50  ;;  %v2120_v2 = vld [vmem:[%s3721_s11 + $0x20] sm:$0xff]  ;;  %v2121_v32 = vld [vmem:[%s3721_s11 + $0x28] sm:$0xff] }
 0x4be   :  { %v1989_v5 = vpop.f32.mrf.mxu0  ;;  %v2106_v48 = vmax.f32 %v2090_v28, 0.0  ;;  %v2101_v49 = vmax.f32 %v2085_v62, 0.0  ;;  %v2100_v35 = vmax.f32 %v2084_v56, 0.0 }
 0x4bf   :  { %v1990_v60 = vadd.f32 %v1989_v5, %v1851_v44  ;;  %v2097_v13 = vadd.f32 %v2062_v41, %v1986_v12  ;;  %v2112_v15 = vmax.f32 %v2096_v34, 0.0  ;;  %v2087_v36 = vadd.f32 %v2042_v9, %v1956_v1  ;;  %v2119_v41 = vld [vmem:[%s3721_s11 + $0x18] sm:$0xff]  ;;  %v2122_v5 = vld [vmem:[%s3721_s11 + $0x30] sm:$0xff]  ;;  %v2170_v42 = vpop.permute.xlu1 %2169 }
 0x4c0   :  { %v1991_v16 = vpop.f32.mrf.mxu0  ;;  %v2102_v24 = vmax.f32 %v2086_v45, 0.0  ;;  %v2123_v12 = vld [vmem:[%s3721_s11 + $0x38] sm:$0xff] }
 0x4c1   :  { %v1992_v37 = vadd.f32 %v1991_v16, %v1851_v44  ;;  %v2098_v10 = vadd.f32 %v2034_v59, %v1990_v60  ;;  %v2113_v11 = vmax.f32 %v2097_v13, 0.0  ;;  %v2111_v44 = vmax.f32 %v2095_v20, 0.0  ;;  %v2116_v59 = vld [vmem:[%s3721_s11] sm:$0xff] }
 0x4c2   :  { %v2103_v63 = vmax.f32 %v2087_v36, 0.0 }
 0x4c3   :  { %v2099_v17 = vadd.f32 %v2066_v53, %v1992_v37  ;;  %v2114_v26 = vmax.f32 %v2098_v10, 0.0  ;;  %v2104_v53 = vmax.f32 %v2088_v57, 0.0  ;;  %v2160_v34 = vpop.permute.xlu1 %2159 }
 0x4c5   :  { %v2115_v22 = vmax.f32 %v2099_v17, 0.0 }
 0x4c7   :  { %2212 = vmatprep.subr.mxu1 %v2115_v22  ;;  %v2165_v22 = vpop.permute.xlu0 %2164  ;;  %v2155_v43 = vpop.permute.xlu1 %2154 }
 0x4c8   :  { %2213 = vmatpush1.msra.mxu1 %v2114_v26 }
 0x4c9   :  { %2214 = vmatprep.subr.mxu1 %v2113_v11 }
 0x4ca   :  { %2215 = vmatpush1.msra.mxu1 %v2112_v15 }
 0x4cb   :  { %2216 = vmatprep.subr.mxu1 %v2111_v44  ;;  %v2150_v39 = vpop.permute.xlu0 %2149  ;;  %v2145_v44 = vpop.permute.xlu1 %2144 }
 0x4cc   :  { %2217 = vmatpush1.msra.mxu1 %v2110_v55 }
 0x4cd   :  { %2218 = vmatprep.subr.mxu1 %v2109_v19 }
 0x4ce   :  { %2219 = vmatpush1.msra.mxu1 %v2108_v54 }
 0x4cf   :  { %2220 = vmatprep.subr.mxu1 %v2107_v31  ;;  %v2140_v38 = vpop.permute.xlu0 %2139 }
 0x4d0   :  { %2221 = vmatpush1.msra.mxu1 %v2106_v48  ;;  %v2135_v48 = vpop.permute.xlu1 %2134 }
 0x4d1   :  { %2222 = vmatprep.subr.mxu1 %v2105_v4 }
 0x4d2   :  { %2223 = vmatpush1.msra.mxu1 %v2104_v53 }
 0x4d3   :  { %2224 = vmatprep.subr.mxu1 %v2103_v63 }
 0x4d4   :  { %2225 = vmatpush1.msra.mxu1 %v2102_v24 }
 0x4d5   :  { %2226 = vmatprep.subr.mxu1 %v2101_v49 }
 0x4d6   :  { %2227 = vmatpush1.msra.mxu1 %v2100_v35 }
 0x4d7   :  { %2515 = vmatmul.mubr.msk.f32.vlgmr.msra.gmra.mxu1 %vm3746_vm14, %v2116_v59 }
 0x4d8   :  { %2266 = vmatprep.mubr.f32.mxu1 %v2739_v0 }
 0x4db   :  { %2516 = vmatmul.mubr.msk.f32.gmra.mxu1 %vm3747_vm1, %v2117_v6  ;;  %v2325_v6 = vld [vmem:[%s3722_s13] sm:$0x1] }
 0x4dc   :  { %2272 = vmatprep.mubr.f32.mxu1 %v2739_v0 }
 0x4df   :  { %2517 = vmatmul.mubr.msk.f32.gmra.mxu1 %vm3748_vm10, %v2118_v8  ;;  %v2333_v8 = vshrl.u32 %v573_v27, 7 }
 0x4e0   :  { %2278 = vmatprep.mubr.f32.mxu1 %v2739_v0 }
 0x4e3   :  { %2518 = vmatmul.mubr.msk.f32.gmra.mxu1 %vm3749_vm2, %v2119_v41  ;;  %v2334_v41 = vsub.s32 0, %v2333_v8 }
 0x4e4   :  { %2284 = vmatprep.mubr.f32.mxu1 %v2739_v0 }
 0x4e7   :  { %2519 = vmatmul.mubr.msk.f32.gmra.mxu1 %vm3750_vm7, %v2120_v2  ;;  %v2330_v2 = vpop.permute.xlu0 %2329 }
 0x4e8   :  { %2290 = vmatprep.mubr.f32.mxu1 %v2739_v0 }
 0x4eb   :  { %2520 = vmatmul.mubr.msk.f32.gmra.mxu1 %vm3751_vm3, %v2121_v32  ;;  %v2335_v32 = vrot.slane %v2330_v2, %v2334_v41 }
 0x4ec   :  { %2296 = vmatprep.mubr.f32.mxu1 %v2739_v0 }
 0x4ef   :  { %2521 = vmatmul.mubr.msk.f32.gmra.mxu1 %vm3752_vm8, %v2122_v5 }
 0x4f0   :  { %2302 = vmatprep.mubr.f32.mxu1 %v2739_v0 }
 0x4f3   :  { %2522 = vmatmul.mubr.msk.f32.gmra.mxu1 %vm3753_vm6, %v2123_v12 }
 0x4f4   :  { %2403 = vmatprep.mubr.f32.mxu1 %v2739_v0 }
 0x597   :  { %v2262_v60 = vpop.f32.mrf.mxu1 }
 0x598   :  { %v2263_v53 = vadd.f32 %v2262_v60, %v2135_v48 }
 0x599   :  { %v2264_v7 = vpop.f32.mrf.mxu1 }
 0x59a   :  { %v2265_v4 = vadd.f32 %v2264_v7, %v2135_v48  ;;  %v2309_v59 = vmax.f32 %v2263_v53, 0.0 }
 0x59b   :  { %v2268_v16 = vpop.f32.mrf.mxu1 }
 0x59c   :  { %v2269_v40 = vadd.f32 %v2268_v16, %v2140_v38  ;;  %v2310_v35 = vmax.f32 %v2265_v4, 0.0 }
 0x59d   :  { %v2270_v21 = vpop.f32.mrf.mxu1 }
 0x59e   :  { %v2271_v51 = vadd.f32 %v2270_v21, %v2140_v38  ;;  %v2311_v49 = vmax.f32 %v2269_v40, 0.0 }
 0x59f   :  { %v2274_v37 = vpop.f32.mrf.mxu1 }
 0x5a0   :  { %v2275_v36 = vadd.f32 %v2274_v37, %v2145_v44  ;;  %v2312_v24 = vmax.f32 %v2271_v51, 0.0 }
 0x5a1   :  { %v2276_v52 = vpop.f32.mrf.mxu1 }
 0x5a2   :  { %v2277_v57 = vadd.f32 %v2276_v52, %v2145_v44  ;;  %v2313_v63 = vmax.f32 %v2275_v36, 0.0 }
 0x5a3   :  { %v2280_v14 = vpop.f32.mrf.mxu1 }
 0x5a4   :  { %v2281_v61 = vadd.f32 %v2280_v14, %v2150_v39  ;;  %v2314_v56 = vmax.f32 %v2277_v57, 0.0 }
 0x5a5   :  { %v2282_v10 = vpop.f32.mrf.mxu1 }
 0x5a6   :  { %v2283_v55 = vadd.f32 %v2282_v10, %v2150_v39  ;;  %v2315_v62 = vmax.f32 %v2281_v61, 0.0 }
 0x5a7   :  { %v2286_v9 = vpop.f32.mrf.mxu1 }
 0x5a8   :  { %v2287_v50 = vadd.f32 %v2286_v9, %v2155_v43  ;;  %v2316_v45 = vmax.f32 %v2283_v55, 0.0 }
 0x5a9   :  { %v2288_v13 = vpop.f32.mrf.mxu1 }
 0x5aa   :  { %v2289_v1 = vadd.f32 %v2288_v13, %v2155_v43  ;;  %v2317_v31 = vmax.f32 %v2287_v50, 0.0 }
 0x5ab   :  { %v2292_v17 = vpop.f32.mrf.mxu1 }
 0x5ac   :  { %v2293_v15 = vadd.f32 %v2292_v17, %v2160_v34  ;;  %v2318_v54 = vmax.f32 %v2289_v1, 0.0 }
 0x5ad   :  { %v2294_v30 = vpop.f32.mrf.mxu1 }
 0x5ae   :  { %v2295_v23 = vadd.f32 %v2294_v30, %v2160_v34  ;;  %v2319_v19 = vmax.f32 %v2293_v15, 0.0 }
 0x5af   :  { %v2298_v47 = vpop.f32.mrf.mxu1 }
 0x5b0   :  { %v2299_v11 = vadd.f32 %v2298_v47, %v2165_v22  ;;  %v2320_v58 = vmax.f32 %v2295_v23, 0.0 }
 0x5b1   :  { %v2300_v20 = vpop.f32.mrf.mxu1 }
 0x5b2   :  { %v2301_v25 = vadd.f32 %v2300_v20, %v2165_v22  ;;  %v2321_v28 = vmax.f32 %v2299_v11, 0.0 }
 0x5b3   :  { %v2304_v46 = vpop.f32.mrf.mxu1 }
 0x5b4   :  { %v2305_v0 = vadd.f32 %v2304_v46, %v2170_v42  ;;  %v2322_v18 = vmax.f32 %v2301_v25, 0.0 }
 0x5b5   :  { %v2306_v26 = vpop.f32.mrf.mxu1 }
 0x5b6   :  { %v2307_v29 = vadd.f32 %v2306_v26, %v2170_v42  ;;  %v2323_v3 = vmax.f32 %v2305_v0, 0.0 }
 0x5b8   :  { %v2324_v33 = vmax.f32 %v2307_v29, 0.0 }
 0x5ba   :  { %2355 = vmatprep.subr.mxu1 %v2324_v33 }
 0x5bb   :  { %2356 = vmatpush1.msra.mxu1 %v2323_v3 }
 0x5bc   :  { %2357 = vmatprep.subr.mxu1 %v2322_v18 }
 0x5bd   :  { %2358 = vmatpush1.msra.mxu1 %v2321_v28 }
 0x5be   :  { %2359 = vmatprep.subr.mxu1 %v2320_v58 }
 0x5bf   :  { %2360 = vmatpush1.msra.mxu1 %v2319_v19 }
 0x5c0   :  { %2361 = vmatprep.subr.mxu1 %v2318_v54 }
 0x5c1   :  { %2362 = vmatpush1.msra.mxu1 %v2317_v31 }
 0x5c2   :  { %2363 = vmatprep.subr.mxu1 %v2316_v45 }
 0x5c3   :  { %2364 = vmatpush1.msra.mxu1 %v2315_v62 }
 0x5c4   :  { %2365 = vmatprep.subr.mxu1 %v2314_v56 }
 0x5c5   :  { %2366 = vmatpush1.msra.mxu1 %v2313_v63 }
 0x5c6   :  { %2367 = vmatprep.subr.mxu1 %v2312_v24 }
 0x5c7   :  { %2368 = vmatpush1.msra.mxu1 %v2311_v49 }
 0x5c8   :  { %2369 = vmatprep.subr.mxu1 %v2310_v35 }
 0x5c9   :  { %2370 = vmatpush1.msra.mxu1 %v2309_v59 }
 0x5ca   :  { %2523 = vmatmul.mubr.msk.f32.vlgmr.msra.gmra.mxu1 %vm3754_vm15, %v2325_v6 }
 0x68a   :  { %v2405_v5 = vpop.f32.mrf.mxu1 }
 0x68b   :  { %v2406_v12 = vadd.f32 %v2405_v5, %v2335_v32 }
 0x68c   :  { %v2407_v60 = vpop.f32.mrf.mxu1 }
 0x68d   :  { %v2408_v7 = vadd.f32 %v2407_v60, %v2335_v32  ;;  %v2410_v16 = vsel %vm1786_vm11, %v2406_v12, -inf }
 0x68e   :  { %2411 = vmax.xlane.f32.xlu1 %v2410_v16 }
 0x68f   :  { %v2427_v21 = vsel %vm1786_vm11, %v2408_v7, -inf }
 0x690   :  { %2428 = vmax.xlane.f32.xlu0 %v2427_v21 }
 0x717   :  { %v2412_v37 = vpop.xlane.xlu1 %2411 }
 0x718   :  { %v2413_v52 = vsub.f32 %v2406_v12, %v2412_v37 }
 0x719   :  { %v2429_v14 = vpop.xlane.xlu0 %2428 }
 0x71a   :  { %v2414_v10 = vmul.f32 1.442695, %v2413_v52  ;;  %v2430_v9 = vsub.f32 %v2408_v7, %v2429_v14 }
 0x71c   :  { %2730 = vpow2.f32 %v2414_v10  ;;  %v2431_v42 = vmul.f32 1.442695, %v2430_v9 }
 0x71e   :  { %2732 = vpow2.f32 %v2431_v42 }
 0x729   :  { %v2731_v13 = vpop.eup %2730 }
 0x72a   :  { %v2416_v17 = vsel %vm1786_vm11, %v2731_v13, 0.0 }
 0x72b   :  { %v2733_v30 = vpop.eup %2732  ;;  %2417 = vadd.xlane.f32.xlu0 %v2416_v17 }
 0x72c   :  { %v2433_v34 = vsel %vm1786_vm11, %v2733_v30, 0.0 }
 0x72d   :  { %2434 = vadd.xlane.f32.xlu1 %v2433_v34 }
 0x7b4   :  { %v2418_v47 = vpop.xlane.xlu0 %2417 }
 0x7b5   :  { %2734 = vrcp.f32 %v2418_v47 }
 0x7b6   :  { %v2435_v20 = vpop.xlane.xlu1 %2434 }
 0x7b7   :  { %2736 = vrcp.f32 %v2435_v20 }
 0x7c2   :  { %v2735_v22 = vpop.eup %2734 }
 0x7c3   :  { %v2420_v46 = vmul.f32 12.969111, %v2735_v22 }
 0x7c4   :  { %v2737_v43 = vpop.eup %2736 }
 0x7c5   :  { %v2421_v0 = vmul.f32 %v2731_v13, %v2420_v46  ;;  %v2437_v26 = vmul.f32 12.969111, %v2737_v43 }
 0x7c7   :  { %2426 = vst.msk [vmem:[%s3723_s15] sm:$0x1] %vm2424_vm0, %v2421_v0  ;;  %v2438_v25 = vmul.f32 %v2733_v30, %v2437_v26 }
 0x7c9   :  { %2439 = vst.msk [vmem:[%s3723_s15 + $0x1] sm:$0x1] %vm2424_vm0, %v2438_v25 }

</bundles_post_ra>
